<compile_context>
chip_gen: v7x
topology: tpu7x:2x2x1
jax: 0.10.0
libtpu: 0.0.40
codegen_flags: <defaults>
</compile_context>

<pallas_src>
import math

import numpy as np
import jax
import jax.numpy as jnp
from jax.experimental import pallas as pl
from jax.experimental.pallas import tpu as pltpu


TWO_PI_ISH = 2.0 * 3.1415926654   # constant used verbatim in the torch module
G_START = -4.5
G_STEP = 0.01
MAX_P = 15


def _round_up(x, m):
    return (x + m - 1) // m * m


def make_fused_kernel(J, n_blocks):
    """Shifted-block Toeplitz conv + segment-mean resample + warped continuum."""

    def kernel(xpad_ref, wt_ref, rt_ref, dt_ref, w_ref, o_ref, conv_ref):
        # xpad_ref: (J + n_blocks - 1, 128) f32   padded flux, row r = xpad[128r : 128r+128]
        # wt_ref:   (128*n_blocks, 128)     bf16  Toeplitz weights WT[m, l] = w[m - l]
        # rt_ref:   (128*J, BP)             bf16  segment-averaging matrix
        # dt_ref:   (16, BP)                f32   design matrix^T (+ row of ones for bias)
        # w_ref:    (1, 16)                 f32   linear weights (+ bias)
        # o_ref:    (1, BP)                 f32   resampled flux * warped continuum
        # conv_ref: (J, 128)                f32   VMEM scratch: convolved flux blocks

        # ---- Gaussian 'same' conv1d as 9 bf16 MXU pushes (f32 accumulation) ----
        acc = jnp.zeros((J, 128), jnp.float32)
        for q in range(n_blocks):                             # static unroll
            xq = xpad_ref[q:q + J, :].astype(jnp.bfloat16)    # (J, 128)
            wq = wt_ref[128 * q:128 * (q + 1), :]             # (128, 128) bf16
            acc = acc + jnp.dot(xq, wq, preferred_element_type=jnp.float32)
        conv_ref[...] = acc

        # ---- resampled = conv_flat(1, N) @ RT(N, BP), K-tiled by 128 ----
        bp = o_ref.shape[1]
        res = jnp.zeros((1, bp), jnp.float32)
        for j in range(J):                                    # static unroll
            row = conv_ref[j:j + 1, :]                        # (1, 128) f32
            rt_blk = rt_ref[128 * j:128 * (j + 1), :].astype(jnp.float32)
            res = res + jnp.dot(row, rt_blk, preferred_element_type=jnp.float32)

        # ---- warped continuum (bias folded into the last design row) ----
        continuum = jnp.dot(w_ref[...], dt_ref[...], preferred_element_type=jnp.float32)
        o_ref[...] = res * continuum

    return kernel


class InstrumentalModelPallas:
    def __init__(self, wl_bin_edges, wl_native, linear_weight, linear_bias,
                 ln_sigma_angs=-2.8134):
        wl_bin_edges = np.asarray(wl_bin_edges, dtype=np.float64)
        wl_native = np.asarray(wl_native, dtype=np.float64)

        self.N = int(wl_native.shape[0])
        assert self.N % 128 == 0, "native grid length must be a multiple of 128"
        self.J = self.N // 128

        self.wl_centers = (wl_bin_edges[1:] + wl_bin_edges[:-1]) / 2.0
        self.median_wl = np.median(self.wl_centers)
        # NOTE: sum (not difference) of the edges — faithfully mirrors the torch module.
        self.bandwidth = wl_bin_edges[-1] + wl_bin_edges[0]
        self.ln_sigma_angs = float(ln_sigma_angs)

        # kernel grid: torch.arange(-4.5, 4.51, 0.01) -> 901 taps, 'same' padding
        self.K = 901
        self.P = (self.K - 1) // 2
        self.M_pad = _round_up(self.K + 127, 128)
        self.n_blocks = self.M_pad // 128
        self.xpad_rows = self.J + self.n_blocks - 1
        self.xpad_len = 128 * self.xpad_rows
        assert self.xpad_len >= self.P + self.N

        # Host-precomputed Toeplitz weight matrix (sigma fixed at __init__): the kernel
        # receives a ready-made bf16 weight tile and does pure MXU work.
        sigma = 0.01 + math.exp(self.ln_sigma_angs)
        grid = G_START + G_STEP * np.arange(self.K, dtype=np.float64)
        w = (1.0 / (sigma * math.sqrt(TWO_PI_ISH))
             * np.exp(-0.5 * grid ** 2 / sigma ** 2) * 0.01)
        d = np.arange(self.M_pad)[:, None] - np.arange(128)[None, :]   # tap index m - l
        WT = np.where((d >= 0) & (d < self.K), w[np.clip(d, 0, self.K - 1)], 0.0)
        self.WT = jnp.asarray(WT, dtype=jnp.bfloat16)

        # static segment bookkeeping (mirrors searchsorted/unique in torch __init__)
        labels = np.searchsorted(wl_bin_edges, wl_native)
        uniq, counts = np.unique(labels, return_counts=True)
        starts = np.concatenate([[0], np.cumsum(counts)[:-1]])
        n_out = len(uniq) - 2                          # first & last segments dropped
        n_bins = len(wl_bin_edges) - 1
        assert n_out == n_bins, "wl_native must span beyond the bin edges"
        self.n_out = n_out
        self.BP = _round_up(max(n_out, 1), 128)

        # Segment-averaging matrix, stored bf16 (halves its HBM/VMEM bytes; cols >= n_out
        # stay zero so padded lanes come out as exactly 0 and are sliced off).
        RT = np.zeros((self.N, self.BP), dtype=np.float64)
        for b in range(n_out):
            s = int(starts[b + 1])
            c = int(counts[b + 1])
            RT[s:s + c, b] = 1.0 / c
        self.RT = jnp.asarray(RT, dtype=jnp.bfloat16)

        # Warped-continuum design matrix with bias folded in as a row of ones (no SMEM
        # scalar needed in the kernel).
        p_exp = np.arange(1, MAX_P + 1)
        wl_normed = (self.wl_centers - self.median_wl) / self.bandwidth
        design = wl_normed[:, None] ** p_exp[None, :]              # (n_out, 15)
        DT = np.zeros((MAX_P + 1, self.BP), dtype=np.float64)
        DT[:MAX_P, :n_out] = design.T
        DT[MAX_P, :] = 1.0                                         # bias row
        self.DT = jnp.asarray(DT, dtype=jnp.float32)

        W = np.zeros((1, MAX_P + 1), dtype=np.float64)
        W[0, :MAX_P] = np.asarray(linear_weight, np.float64).reshape(MAX_P)
        W[0, MAX_P] = float(np.asarray(linear_bias, np.float64).reshape(()))
        self.W = jnp.asarray(W, dtype=jnp.float32)

        self._kernel = make_fused_kernel(self.J, self.n_blocks)
        self._forward = jax.jit(self._forward_impl)

    def _forward_impl(self, high_res_model):
        flux = jnp.asarray(high_res_model, dtype=jnp.float32)

        # Layout plumbing: zero-pad for 'same' conv and reshape into 128-lane rows.
        # Each native sample appears exactly once (no 9x im2col expansion).
        xpad = jnp.zeros((self.xpad_len,), jnp.float32).at[self.P:self.P + self.N].set(flux)
        xpad2d = xpad.reshape(self.xpad_rows, 128)

        vmem = pl.BlockSpec(memory_space=pltpu.MemorySpace.VMEM)

        out_row = pl.pallas_call(
            self._kernel,
            out_shape=jax.ShapeDtypeStruct((1, self.BP), jnp.float32),
            in_specs=[vmem, vmem, vmem, vmem, vmem],
            out_specs=vmem,
            scratch_shapes=[pltpu.VMEM((self.J, 128), jnp.float32)],
        )(xpad2d, self.WT, self.RT, self.DT, self.W)

        return out_row[0, :self.n_out]

    def __call__(self, high_res_model):
        return self._forward(high_res_model)


def reference_forward(wl_bin_edges, wl_native, flux, ln_sigma, lin_w, lin_b):
    """Pure numpy float64 reference reproducing the torch forward."""
    wl_bin_edges = np.asarray(wl_bin_edges, np.float64)
    wl_native = np.asarray(wl_native, np.float64)
    flux = np.asarray(flux, np.float64)
    sigma = 0.01 + math.exp(ln_sigma)
    kernel_grid = -4.5 + 0.01 * np.arange(901)
    w = (1.0 / (sigma * math.sqrt(TWO_PI_ISH))
         * np.exp(-0.5 * kernel_grid ** 2 / sigma ** 2) * 0.01)
    # torch conv1d = cross-correlation with symmetric 'same' zero padding (odd K)
    conv = np.convolve(flux, w[::-1], mode="same")
    labels = np.searchsorted(wl_bin_edges, wl_native)
    uniq, counts = np.unique(labels, return_counts=True)
    starts = np.concatenate([[0], np.cumsum(counts)[:-1]])
    means = np.array([conv[starts[i]:starts[i] + counts[i]].mean()
                      for i in range(len(uniq))])
    resampled = means[1:-1]
    centers = (wl_bin_edges[1:] + wl_bin_edges[:-1]) / 2.0
    median_wl = np.median(centers)
    bandwidth = wl_bin_edges[-1] + wl_bin_edges[0]
    wl_normed = (centers - median_wl) / bandwidth
    design = wl_normed[:, None] ** np.arange(1, MAX_P + 1)[None, :]
    continuum = design @ np.asarray(lin_w, np.float64).reshape(MAX_P) + float(lin_b)
    return resampled * continuum


if __name__ == "__main__":
    key = jax.random.PRNGKey(0)
    n_bins = 30
    N = 2048
    wl_bin_edges = np.linspace(10000.0, 10030.0, n_bins + 1)
    wl_native = np.linspace(9999.5, 10030.5, N)   # spans beyond the edges

    k_flux, k_w = jax.random.split(key)
    flux = 1.0 + 0.2 * jax.random.uniform(k_flux, (N,), dtype=jnp.float32)

    # Parameters (deterministic, in-script).  ln_sigma matches the torch __init__.
    # The torch __init__ zeroes the linear weights (bias=1), which would make the
    # continuum trivially 1; use small deterministic values to exercise the matmul.
    ln_sigma = -2.8134
    lin_w = 0.5 * jax.random.normal(k_w, (MAX_P,), dtype=jnp.float32)
    lin_b = 1.0

    model = InstrumentalModelPallas(wl_bin_edges, wl_native, lin_w, lin_b, ln_sigma)
    out = model(flux)
    out = jax.block_until_ready(out)

    ref = reference_forward(wl_bin_edges, wl_native, np.asarray(flux),
                            ln_sigma, np.asarray(lin_w), lin_b)
    assert out.shape == (n_bins,)
    np.testing.assert_allclose(np.asarray(out, np.float64), ref, rtol=2e-2, atol=1e-3)
    print("KERNEL_OK")
</pallas_src>

<mosaic_0001>
module attributes {stable_mosaic.version = 11 : i64} {
  func.func @kernel(%arg0: memref<24x128xf32, #tpu.memory_space<vmem>>, %arg1: memref<1152x128xbf16, #tpu.memory_space<vmem>>, %arg2: memref<2048x128xbf16, #tpu.memory_space<vmem>>, %arg3: memref<16x128xf32, #tpu.memory_space<vmem>>, %arg4: memref<1x16xf32, #tpu.memory_space<vmem>>, %arg5: memref<1x128xf32, #tpu.memory_space<vmem>>, %arg6: memref<16x128xf32, #tpu.memory_space<vmem>>) attributes {dimension_semantics = [], scalar_prefetch = 0 : i64, scratch_operands = 1 : i64, tpu.core_type = #tpu.core_type<tc>} {
    %cst = arith.constant 0.000000e+00 : f32
    %0 = vector.broadcast %cst : f32 to vector<16x128xf32>
    %c0 = arith.constant 0 : index
    %c0_0 = arith.constant 0 : index
    %1 = vector.load %arg0[%c0, %c0_0] : memref<24x128xf32, #tpu.memory_space<vmem>>, vector<16x128xf32>
    %2 = arith.truncf %1 : vector<16x128xf32> to vector<16x128xbf16>
    %c0_1 = arith.constant 0 : index
    %c0_2 = arith.constant 0 : index
    %3 = vector.load %arg1[%c0_1, %c0_2] : memref<1152x128xbf16, #tpu.memory_space<vmem>>, vector<128x128xbf16>
    %cst_3 = arith.constant dense<0.000000e+00> : vector<16x128xf32>
    %4 = tpu.matmul %2, %3, %cst_3 {dimension_numbers = #tpu.dot_dimension_numbers<[1], [0], [0], [1], [0, 0, 1, 1], [], []>} : vector<16x128xbf16>, vector<128x128xbf16>, vector<16x128xf32> -> vector<16x128xf32>
    %5 = arith.addf %0, %4 : vector<16x128xf32>
    %c1 = arith.constant 1 : index
    %c0_4 = arith.constant 0 : index
    %6 = vector.load %arg0[%c1, %c0_4] : memref<24x128xf32, #tpu.memory_space<vmem>>, vector<16x128xf32>
    %7 = arith.truncf %6 : vector<16x128xf32> to vector<16x128xbf16>
    %c128 = arith.constant 128 : index
    %c0_5 = arith.constant 0 : index
    %8 = vector.load %arg1[%c128, %c0_5] : memref<1152x128xbf16, #tpu.memory_space<vmem>>, vector<128x128xbf16>
    %cst_6 = arith.constant dense<0.000000e+00> : vector<16x128xf32>
    %9 = tpu.matmul %7, %8, %cst_6 {dimension_numbers = #tpu.dot_dimension_numbers<[1], [0], [0], [1], [0, 0, 1, 1], [], []>} : vector<16x128xbf16>, vector<128x128xbf16>, vector<16x128xf32> -> vector<16x128xf32>
    %10 = arith.addf %5, %9 : vector<16x128xf32>
    %c2 = arith.constant 2 : index
    %c0_7 = arith.constant 0 : index
    %11 = vector.load %arg0[%c2, %c0_7] : memref<24x128xf32, #tpu.memory_space<vmem>>, vector<16x128xf32>
    %12 = arith.truncf %11 : vector<16x128xf32> to vector<16x128xbf16>
    %c256 = arith.constant 256 : index
    %c0_8 = arith.constant 0 : index
    %13 = vector.load %arg1[%c256, %c0_8] : memref<1152x128xbf16, #tpu.memory_space<vmem>>, vector<128x128xbf16>
    %cst_9 = arith.constant dense<0.000000e+00> : vector<16x128xf32>
    %14 = tpu.matmul %12, %13, %cst_9 {dimension_numbers = #tpu.dot_dimension_numbers<[1], [0], [0], [1], [0, 0, 1, 1], [], []>} : vector<16x128xbf16>, vector<128x128xbf16>, vector<16x128xf32> -> vector<16x128xf32>
    %15 = arith.addf %10, %14 : vector<16x128xf32>
    %c3 = arith.constant 3 : index
    %c0_10 = arith.constant 0 : index
    %16 = vector.load %arg0[%c3, %c0_10] : memref<24x128xf32, #tpu.memory_space<vmem>>, vector<16x128xf32>
    %17 = arith.truncf %16 : vector<16x128xf32> to vector<16x128xbf16>
    %c384 = arith.constant 384 : index
    %c0_11 = arith.constant 0 : index
    %18 = vector.load %arg1[%c384, %c0_11] : memref<1152x128xbf16, #tpu.memory_space<vmem>>, vector<128x128xbf16>
    %cst_12 = arith.constant dense<0.000000e+00> : vector<16x128xf32>
    %19 = tpu.matmul %17, %18, %cst_12 {dimension_numbers = #tpu.dot_dimension_numbers<[1], [0], [0], [1], [0, 0, 1, 1], [], []>} : vector<16x128xbf16>, vector<128x128xbf16>, vector<16x128xf32> -> vector<16x128xf32>
    %20 = arith.addf %15, %19 : vector<16x128xf32>
    %c4 = arith.constant 4 : index
    %c0_13 = arith.constant 0 : index
    %21 = vector.load %arg0[%c4, %c0_13] : memref<24x128xf32, #tpu.memory_space<vmem>>, vector<16x128xf32>
    %22 = arith.truncf %21 : vector<16x128xf32> to vector<16x128xbf16>
    %c512 = arith.constant 512 : index
    %c0_14 = arith.constant 0 : index
    %23 = vector.load %arg1[%c512, %c0_14] : memref<1152x128xbf16, #tpu.memory_space<vmem>>, vector<128x128xbf16>
    %cst_15 = arith.constant dense<0.000000e+00> : vector<16x128xf32>
    %24 = tpu.matmul %22, %23, %cst_15 {dimension_numbers = #tpu.dot_dimension_numbers<[1], [0], [0], [1], [0, 0, 1, 1], [], []>} : vector<16x128xbf16>, vector<128x128xbf16>, vector<16x128xf32> -> vector<16x128xf32>
    %25 = arith.addf %20, %24 : vector<16x128xf32>
    %c5 = arith.constant 5 : index
    %c0_16 = arith.constant 0 : index
    %26 = vector.load %arg0[%c5, %c0_16] : memref<24x128xf32, #tpu.memory_space<vmem>>, vector<16x128xf32>
    %27 = arith.truncf %26 : vector<16x128xf32> to vector<16x128xbf16>
    %c640 = arith.constant 640 : index
    %c0_17 = arith.constant 0 : index
    %28 = vector.load %arg1[%c640, %c0_17] : memref<1152x128xbf16, #tpu.memory_space<vmem>>, vector<128x128xbf16>
    %cst_18 = arith.constant dense<0.000000e+00> : vector<16x128xf32>
    %29 = tpu.matmul %27, %28, %cst_18 {dimension_numbers = #tpu.dot_dimension_numbers<[1], [0], [0], [1], [0, 0, 1, 1], [], []>} : vector<16x128xbf16>, vector<128x128xbf16>, vector<16x128xf32> -> vector<16x128xf32>
    %30 = arith.addf %25, %29 : vector<16x128xf32>
    %c6 = arith.constant 6 : index
    %c0_19 = arith.constant 0 : index
    %31 = vector.load %arg0[%c6, %c0_19] : memref<24x128xf32, #tpu.memory_space<vmem>>, vector<16x128xf32>
    %32 = arith.truncf %31 : vector<16x128xf32> to vector<16x128xbf16>
    %c768 = arith.constant 768 : index
    %c0_20 = arith.constant 0 : index
    %33 = vector.load %arg1[%c768, %c0_20] : memref<1152x128xbf16, #tpu.memory_space<vmem>>, vector<128x128xbf16>
    %cst_21 = arith.constant dense<0.000000e+00> : vector<16x128xf32>
    %34 = tpu.matmul %32, %33, %cst_21 {dimension_numbers = #tpu.dot_dimension_numbers<[1], [0], [0], [1], [0, 0, 1, 1], [], []>} : vector<16x128xbf16>, vector<128x128xbf16>, vector<16x128xf32> -> vector<16x128xf32>
    %35 = arith.addf %30, %34 : vector<16x128xf32>
    %c7 = arith.constant 7 : index
    %c0_22 = arith.constant 0 : index
    %36 = vector.load %arg0[%c7, %c0_22] : memref<24x128xf32, #tpu.memory_space<vmem>>, vector<16x128xf32>
    %37 = arith.truncf %36 : vector<16x128xf32> to vector<16x128xbf16>
    %c896 = arith.constant 896 : index
    %c0_23 = arith.constant 0 : index
    %38 = vector.load %arg1[%c896, %c0_23] : memref<1152x128xbf16, #tpu.memory_space<vmem>>, vector<128x128xbf16>
    %cst_24 = arith.constant dense<0.000000e+00> : vector<16x128xf32>
    %39 = tpu.matmul %37, %38, %cst_24 {dimension_numbers = #tpu.dot_dimension_numbers<[1], [0], [0], [1], [0, 0, 1, 1], [], []>} : vector<16x128xbf16>, vector<128x128xbf16>, vector<16x128xf32> -> vector<16x128xf32>
    %40 = arith.addf %35, %39 : vector<16x128xf32>
    %c8 = arith.constant 8 : index
    %c0_25 = arith.constant 0 : index
    %41 = vector.load %arg0[%c8, %c0_25] : memref<24x128xf32, #tpu.memory_space<vmem>>, vector<16x128xf32>
    %42 = arith.truncf %41 : vector<16x128xf32> to vector<16x128xbf16>
    %c1024 = arith.constant 1024 : index
    %c0_26 = arith.constant 0 : index
    %43 = vector.load %arg1[%c1024, %c0_26] : memref<1152x128xbf16, #tpu.memory_space<vmem>>, vector<128x128xbf16>
    %cst_27 = arith.constant dense<0.000000e+00> : vector<16x128xf32>
    %44 = tpu.matmul %42, %43, %cst_27 {dimension_numbers = #tpu.dot_dimension_numbers<[1], [0], [0], [1], [0, 0, 1, 1], [], []>} : vector<16x128xbf16>, vector<128x128xbf16>, vector<16x128xf32> -> vector<16x128xf32>
    %45 = arith.addf %40, %44 : vector<16x128xf32>
    %c0_28 = arith.constant 0 : index
    %c0_29 = arith.constant 0 : index
    %46 = vector.load %arg6[%c0_28, %c0_29] : memref<16x128xf32, #tpu.memory_space<vmem>>, vector<16x128xf32>
    tpu.vector_store %arg6[%c0_28, %c0_29], %45 {strides = array<i32>} : memref<16x128xf32, #tpu.memory_space<vmem>>, vector<16x128xf32>,
    %cst_30 = arith.constant 0.000000e+00 : f32
    %47 = vector.broadcast %cst_30 : f32 to vector<1x128xf32>
    %c0_31 = arith.constant 0 : index
    %c0_32 = arith.constant 0 : index
    %48 = vector.load %arg6[%c0_31, %c0_32] : memref<16x128xf32, #tpu.memory_space<vmem>>, vector<1x128xf32>
    %c0_33 = arith.constant 0 : index
    %c0_34 = arith.constant 0 : index
    %49 = vector.load %arg2[%c0_33, %c0_34] : memref<2048x128xbf16, #tpu.memory_space<vmem>>, vector<128x128xbf16>
    %50 = arith.extf %49 : vector<128x128xbf16> to vector<128x128xf32>
    %cst_35 = arith.constant dense<0.000000e+00> : vector<1x128xf32>
    %51 = tpu.matmul %48, %50, %cst_35 {dimension_numbers = #tpu.dot_dimension_numbers<[1], [0], [0], [1], [0, 0, 1, 1], [], []>} : vector<1x128xf32>, vector<128x128xf32>, vector<1x128xf32> -> vector<1x128xf32>
    %52 = arith.addf %47, %51 : vector<1x128xf32>
    %c1_36 = arith.constant 1 : index
    %c0_37 = arith.constant 0 : index
    %53 = vector.load %arg6[%c1_36, %c0_37] : memref<16x128xf32, #tpu.memory_space<vmem>>, vector<1x128xf32>
    %c128_38 = arith.constant 128 : index
    %c0_39 = arith.constant 0 : index
    %54 = vector.load %arg2[%c128_38, %c0_39] : memref<2048x128xbf16, #tpu.memory_space<vmem>>, vector<128x128xbf16>
    %55 = arith.extf %54 : vector<128x128xbf16> to vector<128x128xf32>
    %cst_40 = arith.constant dense<0.000000e+00> : vector<1x128xf32>
    %56 = tpu.matmul %53, %55, %cst_40 {dimension_numbers = #tpu.dot_dimension_numbers<[1], [0], [0], [1], [0, 0, 1, 1], [], []>} : vector<1x128xf32>, vector<128x128xf32>, vector<1x128xf32> -> vector<1x128xf32>
    %57 = arith.addf %52, %56 : vector<1x128xf32>
    %c2_41 = arith.constant 2 : index
    %c0_42 = arith.constant 0 : index
    %58 = vector.load %arg6[%c2_41, %c0_42] : memref<16x128xf32, #tpu.memory_space<vmem>>, vector<1x128xf32>
    %c256_43 = arith.constant 256 : index
    %c0_44 = arith.constant 0 : index
    %59 = vector.load %arg2[%c256_43, %c0_44] : memref<2048x128xbf16, #tpu.memory_space<vmem>>, vector<128x128xbf16>
    %60 = arith.extf %59 : vector<128x128xbf16> to vector<128x128xf32>
    %cst_45 = arith.constant dense<0.000000e+00> : vector<1x128xf32>
    %61 = tpu.matmul %58, %60, %cst_45 {dimension_numbers = #tpu.dot_dimension_numbers<[1], [0], [0], [1], [0, 0, 1, 1], [], []>} : vector<1x128xf32>, vector<128x128xf32>, vector<1x128xf32> -> vector<1x128xf32>
    %62 = arith.addf %57, %61 : vector<1x128xf32>
    %c3_46 = arith.constant 3 : index
    %c0_47 = arith.constant 0 : index
    %63 = vector.load %arg6[%c3_46, %c0_47] : memref<16x128xf32, #tpu.memory_space<vmem>>, vector<1x128xf32>
    %c384_48 = arith.constant 384 : index
    %c0_49 = arith.constant 0 : index
    %64 = vector.load %arg2[%c384_48, %c0_49] : memref<2048x128xbf16, #tpu.memory_space<vmem>>, vector<128x128xbf16>
    %65 = arith.extf %64 : vector<128x128xbf16> to vector<128x128xf32>
    %cst_50 = arith.constant dense<0.000000e+00> : vector<1x128xf32>
    %66 = tpu.matmul %63, %65, %cst_50 {dimension_numbers = #tpu.dot_dimension_numbers<[1], [0], [0], [1], [0, 0, 1, 1], [], []>} : vector<1x128xf32>, vector<128x128xf32>, vector<1x128xf32> -> vector<1x128xf32>
    %67 = arith.addf %62, %66 : vector<1x128xf32>
    %c4_51 = arith.constant 4 : index
    %c0_52 = arith.constant 0 : index
    %68 = vector.load %arg6[%c4_51, %c0_52] : memref<16x128xf32, #tpu.memory_space<vmem>>, vector<1x128xf32>
    %c512_53 = arith.constant 512 : index
    %c0_54 = arith.constant 0 : index
    %69 = vector.load %arg2[%c512_53, %c0_54] : memref<2048x128xbf16, #tpu.memory_space<vmem>>, vector<128x128xbf16>
    %70 = arith.extf %69 : vector<128x128xbf16> to vector<128x128xf32>
    %cst_55 = arith.constant dense<0.000000e+00> : vector<1x128xf32>
    %71 = tpu.matmul %68, %70, %cst_55 {dimension_numbers = #tpu.dot_dimension_numbers<[1], [0], [0], [1], [0, 0, 1, 1], [], []>} : vector<1x128xf32>, vector<128x128xf32>, vector<1x128xf32> -> vector<1x128xf32>
    %72 = arith.addf %67, %71 : vector<1x128xf32>
    %c5_56 = arith.constant 5 : index
    %c0_57 = arith.constant 0 : index
    %73 = vector.load %arg6[%c5_56, %c0_57] : memref<16x128xf32, #tpu.memory_space<vmem>>, vector<1x128xf32>
    %c640_58 = arith.constant 640 : index
    %c0_59 = arith.constant 0 : index
    %74 = vector.load %arg2[%c640_58, %c0_59] : memref<2048x128xbf16, #tpu.memory_space<vmem>>, vector<128x128xbf16>
    %75 = arith.extf %74 : vector<128x128xbf16> to vector<128x128xf32>
    %cst_60 = arith.constant dense<0.000000e+00> : vector<1x128xf32>
    %76 = tpu.matmul %73, %75, %cst_60 {dimension_numbers = #tpu.dot_dimension_numbers<[1], [0], [0], [1], [0, 0, 1, 1], [], []>} : vector<1x128xf32>, vector<128x128xf32>, vector<1x128xf32> -> vector<1x128xf32>
    %77 = arith.addf %72, %76 : vector<1x128xf32>
    %c6_61 = arith.constant 6 : index
    %c0_62 = arith.constant 0 : index
    %78 = vector.load %arg6[%c6_61, %c0_62] : memref<16x128xf32, #tpu.memory_space<vmem>>, vector<1x128xf32>
    %c768_63 = arith.constant 768 : index
    %c0_64 = arith.constant 0 : index
    %79 = vector.load %arg2[%c768_63, %c0_64] : memref<2048x128xbf16, #tpu.memory_space<vmem>>, vector<128x128xbf16>
    %80 = arith.extf %79 : vector<128x128xbf16> to vector<128x128xf32>
    %cst_65 = arith.constant dense<0.000000e+00> : vector<1x128xf32>
    %81 = tpu.matmul %78, %80, %cst_65 {dimension_numbers = #tpu.dot_dimension_numbers<[1], [0], [0], [1], [0, 0, 1, 1], [], []>} : vector<1x128xf32>, vector<128x128xf32>, vector<1x128xf32> -> vector<1x128xf32>
    %82 = arith.addf %77, %81 : vector<1x128xf32>
    %c7_66 = arith.constant 7 : index
    %c0_67 = arith.constant 0 : index
    %83 = vector.load %arg6[%c7_66, %c0_67] : memref<16x128xf32, #tpu.memory_space<vmem>>, vector<1x128xf32>
    %c896_68 = arith.constant 896 : index
    %c0_69 = arith.constant 0 : index
    %84 = vector.load %arg2[%c896_68, %c0_69] : memref<2048x128xbf16, #tpu.memory_space<vmem>>, vector<128x128xbf16>
    %85 = arith.extf %84 : vector<128x128xbf16> to vector<128x128xf32>
    %cst_70 = arith.constant dense<0.000000e+00> : vector<1x128xf32>
    %86 = tpu.matmul %83, %85, %cst_70 {dimension_numbers = #tpu.dot_dimension_numbers<[1], [0], [0], [1], [0, 0, 1, 1], [], []>} : vector<1x128xf32>, vector<128x128xf32>, vector<1x128xf32> -> vector<1x128xf32>
    %87 = arith.addf %82, %86 : vector<1x128xf32>
    %c8_71 = arith.constant 8 : index
    %c0_72 = arith.constant 0 : index
    %88 = vector.load %arg6[%c8_71, %c0_72] : memref<16x128xf32, #tpu.memory_space<vmem>>, vector<1x128xf32>
    %c1024_73 = arith.constant 1024 : index
    %c0_74 = arith.constant 0 : index
    %89 = vector.load %arg2[%c1024_73, %c0_74] : memref<2048x128xbf16, #tpu.memory_space<vmem>>, vector<128x128xbf16>
    %90 = arith.extf %89 : vector<128x128xbf16> to vector<128x128xf32>
    %cst_75 = arith.constant dense<0.000000e+00> : vector<1x128xf32>
    %91 = tpu.matmul %88, %90, %cst_75 {dimension_numbers = #tpu.dot_dimension_numbers<[1], [0], [0], [1], [0, 0, 1, 1], [], []>} : vector<1x128xf32>, vector<128x128xf32>, vector<1x128xf32> -> vector<1x128xf32>
    %92 = arith.addf %87, %91 : vector<1x128xf32>
    %c9 = arith.constant 9 : index
    %c0_76 = arith.constant 0 : index
    %93 = vector.load %arg6[%c9, %c0_76] : memref<16x128xf32, #tpu.memory_space<vmem>>, vector<1x128xf32>
    %c1152 = arith.constant 1152 : index
    %c0_77 = arith.constant 0 : index
    %94 = vector.load %arg2[%c1152, %c0_77] : memref<2048x128xbf16, #tpu.memory_space<vmem>>, vector<128x128xbf16>
    %95 = arith.extf %94 : vector<128x128xbf16> to vector<128x128xf32>
    %cst_78 = arith.constant dense<0.000000e+00> : vector<1x128xf32>
    %96 = tpu.matmul %93, %95, %cst_78 {dimension_numbers = #tpu.dot_dimension_numbers<[1], [0], [0], [1], [0, 0, 1, 1], [], []>} : vector<1x128xf32>, vector<128x128xf32>, vector<1x128xf32> -> vector<1x128xf32>
    %97 = arith.addf %92, %96 : vector<1x128xf32>
    %c10 = arith.constant 10 : index
    %c0_79 = arith.constant 0 : index
    %98 = vector.load %arg6[%c10, %c0_79] : memref<16x128xf32, #tpu.memory_space<vmem>>, vector<1x128xf32>
    %c1280 = arith.constant 1280 : index
    %c0_80 = arith.constant 0 : index
    %99 = vector.load %arg2[%c1280, %c0_80] : memref<2048x128xbf16, #tpu.memory_space<vmem>>, vector<128x128xbf16>
    %100 = arith.extf %99 : vector<128x128xbf16> to vector<128x128xf32>
    %cst_81 = arith.constant dense<0.000000e+00> : vector<1x128xf32>
    %101 = tpu.matmul %98, %100, %cst_81 {dimension_numbers = #tpu.dot_dimension_numbers<[1], [0], [0], [1], [0, 0, 1, 1], [], []>} : vector<1x128xf32>, vector<128x128xf32>, vector<1x128xf32> -> vector<1x128xf32>
    %102 = arith.addf %97, %101 : vector<1x128xf32>
    %c11 = arith.constant 11 : index
    %c0_82 = arith.constant 0 : index
    %103 = vector.load %arg6[%c11, %c0_82] : memref<16x128xf32, #tpu.memory_space<vmem>>, vector<1x128xf32>
    %c1408 = arith.constant 1408 : index
    %c0_83 = arith.constant 0 : index
    %104 = vector.load %arg2[%c1408, %c0_83] : memref<2048x128xbf16, #tpu.memory_space<vmem>>, vector<128x128xbf16>
    %105 = arith.extf %104 : vector<128x128xbf16> to vector<128x128xf32>
    %cst_84 = arith.constant dense<0.000000e+00> : vector<1x128xf32>
    %106 = tpu.matmul %103, %105, %cst_84 {dimension_numbers = #tpu.dot_dimension_numbers<[1], [0], [0], [1], [0, 0, 1, 1], [], []>} : vector<1x128xf32>, vector<128x128xf32>, vector<1x128xf32> -> vector<1x128xf32>
    %107 = arith.addf %102, %106 : vector<1x128xf32>
    %c12 = arith.constant 12 : index
    %c0_85 = arith.constant 0 : index
    %108 = vector.load %arg6[%c12, %c0_85] : memref<16x128xf32, #tpu.memory_space<vmem>>, vector<1x128xf32>
    %c1536 = arith.constant 1536 : index
    %c0_86 = arith.constant 0 : index
    %109 = vector.load %arg2[%c1536, %c0_86] : memref<2048x128xbf16, #tpu.memory_space<vmem>>, vector<128x128xbf16>
    %110 = arith.extf %109 : vector<128x128xbf16> to vector<128x128xf32>
    %cst_87 = arith.constant dense<0.000000e+00> : vector<1x128xf32>
    %111 = tpu.matmul %108, %110, %cst_87 {dimension_numbers = #tpu.dot_dimension_numbers<[1], [0], [0], [1], [0, 0, 1, 1], [], []>} : vector<1x128xf32>, vector<128x128xf32>, vector<1x128xf32> -> vector<1x128xf32>
    %112 = arith.addf %107, %111 : vector<1x128xf32>
    %c13 = arith.constant 13 : index
    %c0_88 = arith.constant 0 : index
    %113 = vector.load %arg6[%c13, %c0_88] : memref<16x128xf32, #tpu.memory_space<vmem>>, vector<1x128xf32>
    %c1664 = arith.constant 1664 : index
    %c0_89 = arith.constant 0 : index
    %114 = vector.load %arg2[%c1664, %c0_89] : memref<2048x128xbf16, #tpu.memory_space<vmem>>, vector<128x128xbf16>
    %115 = arith.extf %114 : vector<128x128xbf16> to vector<128x128xf32>
    %cst_90 = arith.constant dense<0.000000e+00> : vector<1x128xf32>
    %116 = tpu.matmul %113, %115, %cst_90 {dimension_numbers = #tpu.dot_dimension_numbers<[1], [0], [0], [1], [0, 0, 1, 1], [], []>} : vector<1x128xf32>, vector<128x128xf32>, vector<1x128xf32> -> vector<1x128xf32>
    %117 = arith.addf %112, %116 : vector<1x128xf32>
    %c14 = arith.constant 14 : index
    %c0_91 = arith.constant 0 : index
    %118 = vector.load %arg6[%c14, %c0_91] : memref<16x128xf32, #tpu.memory_space<vmem>>, vector<1x128xf32>
    %c1792 = arith.constant 1792 : index
    %c0_92 = arith.constant 0 : index
    %119 = vector.load %arg2[%c1792, %c0_92] : memref<2048x128xbf16, #tpu.memory_space<vmem>>, vector<128x128xbf16>
    %120 = arith.extf %119 : vector<128x128xbf16> to vector<128x128xf32>
    %cst_93 = arith.constant dense<0.000000e+00> : vector<1x128xf32>
    %121 = tpu.matmul %118, %120, %cst_93 {dimension_numbers = #tpu.dot_dimension_numbers<[1], [0], [0], [1], [0, 0, 1, 1], [], []>} : vector<1x128xf32>, vector<128x128xf32>, vector<1x128xf32> -> vector<1x128xf32>
    %122 = arith.addf %117, %121 : vector<1x128xf32>
    %c15 = arith.constant 15 : index
    %c0_94 = arith.constant 0 : index
    %123 = vector.load %arg6[%c15, %c0_94] : memref<16x128xf32, #tpu.memory_space<vmem>>, vector<1x128xf32>
    %c1920 = arith.constant 1920 : index
    %c0_95 = arith.constant 0 : index
    %124 = vector.load %arg2[%c1920, %c0_95] : memref<2048x128xbf16, #tpu.memory_space<vmem>>, vector<128x128xbf16>
    %125 = arith.extf %124 : vector<128x128xbf16> to vector<128x128xf32>
    %cst_96 = arith.constant dense<0.000000e+00> : vector<1x128xf32>
    %126 = tpu.matmul %123, %125, %cst_96 {dimension_numbers = #tpu.dot_dimension_numbers<[1], [0], [0], [1], [0, 0, 1, 1], [], []>} : vector<1x128xf32>, vector<128x128xf32>, vector<1x128xf32> -> vector<1x128xf32>
    %127 = arith.addf %122, %126 : vector<1x128xf32>
    %c0_97 = arith.constant 0 : index
    %c0_98 = arith.constant 0 : index
    %128 = vector.load %arg4[%c0_97, %c0_98] : memref<1x16xf32, #tpu.memory_space<vmem>>, vector<1x16xf32>
    %c0_99 = arith.constant 0 : index
    %c0_100 = arith.constant 0 : index
    %129 = vector.load %arg3[%c0_99, %c0_100] : memref<16x128xf32, #tpu.memory_space<vmem>>, vector<16x128xf32>
    %cst_101 = arith.constant dense<0.000000e+00> : vector<1x128xf32>
    %130 = tpu.matmul %128, %129, %cst_101 {dimension_numbers = #tpu.dot_dimension_numbers<[1], [0], [0], [1], [0, 0, 1, 1], [], []>} : vector<1x16xf32>, vector<16x128xf32>, vector<1x128xf32> -> vector<1x128xf32>
    %131 = arith.mulf %127, %130 : vector<1x128xf32>
    %c0_102 = arith.constant 0 : index
    %c0_103 = arith.constant 0 : index
    %132 = vector.load %arg5[%c0_102, %c0_103] : memref<1x128xf32, #tpu.memory_space<vmem>>, vector<1x128xf32>
    tpu.vector_store %arg5[%c0_102, %c0_103], %131 {strides = array<i32>} : memref<1x128xf32, #tpu.memory_space<vmem>>, vector<1x128xf32>,
    return
  }
}

</mosaic_0001>

<bundles_post_ra>
// kernel: _forward_impl.1
= control target key start
LH: loop header
LB: loop body
LE: loop exit
PB: predicated region body
PF: predicated region fallthrough
CT: control target
= control target key end

     0   :  { %10 = vsyncpa [#allocation4], 0  ;;  %s5558_s0 = inlined_call_operand.vmem [shape: f32[24,128], index: 0, kind: input, shape index: {}]   ;;  %s5559_s1 = inlined_call_operand.hbm [shape: bf16[1152,128], index: 1, kind: input, shape index: {}]   ;;  %s5560_s2 = inlined_call_operand.hbm [shape: bf16[2048,128], index: 2, kind: input, shape index: {}]   ;;  %s5561_s3 = inlined_call_operand.vmem [shape: f32[16,128], index: 3, kind: input, shape index: {}]   ;;  %s5562_s4 = inlined_call_operand.vmem [shape: f32[1,16], index: 4, kind: input, shape index: {}]   ;;  %s5563_s5 = inlined_call_operand.vmem [shape: f32[1,128], index: 5, kind: output, shape index: {}]  }
   0x1   :  { %11 = vsyncpa [#allocation6], 0  ;;  %s5174_s18 = smov [#allocation3]   ;;  %s5126_s22 = scalar_lea.hbm %s5559_s1, 9216 }
   0x2   :  { %s19_s19 = sshll.u32 %s5174_s18, 4  ;;  %p5127_p0 = scmp.ne.s32.totalorder %s5559_s1, %s5126_s22  ;;  %s20_s19 = int_to_ptr.vmem [resolvable:$true] %s19_s19 }
   0x3   :  { %p5130_p1 = scmp.lt.u32.totalorder %s5126_s22, %s5559_s1 }
   0x5   :  { %p5132_p2 = pnand %p5130_p1, %p5127_p0 }
   0x7   :  { %5135 = shalt.err (!%p5132_p2)
}
   0x8   :  { %s5136_s27 = scalar_lea.vmem %s20_s19, 9216  ;;  %p5141_p4 = scmp.lt.s32.totalorder %s20_s19, %s20_s19 }
   0x9   :  { %p5137_p3 = scmp.ne.s32.totalorder %s20_s19, %s5136_s27  ;;  %p5142_p5 = scmp.lt.s32.totalorder %s5136_s27, %s5136_s27 }
   0xb   :  { %p5143_p6 = por %p5142_p5, %p5141_p4 }
   0xd   :  { %p5144_p7 = pnand %p5143_p6, %p5137_p3 }
   0xf   :  { %5147 = shalt.err (!%p5144_p7)
}
  0x10   :  { %s5175_s28 = smov 64   ;;  %s5176_s29 = smov 4  }
  0x11   :  { %25 = dma.hbm_to_vmem [thread:$0]  %s5559_s1, 9216, %s20_s19, [#allocation4], %s5175_s28, %s5175_s28, %s5176_s29  }
  0x12   :  { %s5177_s7 = smov [#allocation5]   ;;  %s5148_s11 = scalar_lea.hbm %s5560_s2, 16384 }
  0x13   :  { %s31_s8 = sshll.u32 %s5177_s7, 4  ;;  %p5149_p8 = scmp.ne.s32.totalorder %s5560_s2, %s5148_s11  ;;  %s32_s8 = int_to_ptr.vmem [resolvable:$true] %s31_s8 }
  0x14   :  { %p5152_p9 = scmp.lt.u32.totalorder %s5148_s11, %s5560_s2 }
  0x16   :  { %p5154_p10 = pnand %p5152_p9, %p5149_p8 }
  0x18   :  { %5157 = shalt.err (!%p5154_p10)
}
  0x19   :  { %s5158_s16 = scalar_lea.vmem %s32_s8, 16384  ;;  %p5163_p12 = scmp.lt.s32.totalorder %s32_s8, %s32_s8 }
  0x1a   :  { %p5159_p11 = scmp.ne.s32.totalorder %s32_s8, %s5158_s16  ;;  %p5164_p13 = scmp.lt.s32.totalorder %s5158_s16, %s5158_s16 }
  0x1c   :  { %p5165_p0 = por %p5164_p13, %p5163_p12 }
  0x1e   :  { %p5166_p1 = pnand %p5165_p0, %p5159_p11 }
  0x20   :  { %5169 = shalt.err (!%p5166_p1)
}
  0x21   :  { %37 = dma.hbm_to_vmem [thread:$0]  %s5560_s2, 16384, %s32_s8, [#allocation6], %s5175_s28, %s5175_s28, %s5176_s29  }
  0x22   :  { %5170 = dma.done.wait [#allocation4], 9216  }
  0x23   :  { %5171 = vsyncadd [#allocation4], 4294958080 }
  0x24   :  { %5172 = dma.done.wait [#allocation6], 16384  }
  0x25   :  { %5173 = vsyncadd [#allocation6], 4294950912  ;;  %v5178_v0 = vmov 0.0   ;;  %vm5179_vm0 = vmmov 0   ;;  %v5054_v1 = vld [vmem:[#allocation3 + $0x40] sm:$0xff]   ;;  %v5055_v2 = vld [vmem:[#allocation3 + $0x48] sm:$0xff]  }
  0x26   :  { %3852 = vmatprep.subr.bf16.mxu0 %v5178_v0  ;;  %3868 = vmatprep.mubr.msk.bf16.mxu0 %vm5179_vm0, %v5178_v0  ;;  %v5056_v3 = vld [vmem:[#allocation3 + $0x50] sm:$0xff]   ;;  %v5057_v4 = vld [vmem:[#allocation3 + $0x58] sm:$0xff]   ;;  %v5058_v5 = vld [vmem:[#allocation3 + $0x60] sm:$0xff]   ;;  %v5180_v59 = vmov 0.0|0.0   ;;  %vm2702_vm1 = vcmask 130048  }
  0x27   :  { %4169 = vmatprep.mubr.msk.f32.mxu1 %vm5179_vm0, %v5178_v0  ;;  %3853 = vmatpush3.bf16.msra.mxu0 %v5054_v1  ;;  %v5059_v6 = vld [vmem:[#allocation3 + $0x68] sm:$0xff]   ;;  %v5060_v7 = vld [vmem:[#allocation3 + $0x70] sm:$0xff]   ;;  %v5061_v8 = vld [vmem:[#allocation3 + $0x78] sm:$0xff]  }
  0x28   :  { %3854 = vmatprep.subr.bf16.mxu0 %v5178_v0  ;;  %v68_v9 = vld [vmem:[%s5558_s0 + $0x1] sm:$0xff]  ;;  %v69_v10 = vld [vmem:[%s5558_s0 + $0x9] sm:$0xff]  ;;  %v5063_v13 = vld [vmem:[#allocation3 + $0x8] sm:$0xff]   ;;  %4671 = vmatprep.subr.bf16.mxu1 %v5180_v59 }
  0x29   :  { %v70_v11 = vpack.c.bf16 %v69_v10, %v68_v9  ;;  %v5062_v12 = vld [vmem:[#allocation3] sm:$0xff]   ;;  %v5064_v14 = vld [vmem:[#allocation3 + $0x10] sm:$0xff]   ;;  %v5065_v15 = vld [vmem:[#allocation3 + $0x18] sm:$0xff]  }
  0x2a   :  { %v5066_v16 = vld [vmem:[#allocation3 + $0x20] sm:$0xff]   ;;  %v5067_v17 = vld [vmem:[#allocation3 + $0x28] sm:$0xff]   ;;  %v5068_v18 = vld [vmem:[#allocation3 + $0x30] sm:$0xff]  }
  0x2b   :  { %3855 = vmatpush3.bf16.msra.mxu0 %v5055_v2  ;;  %v5069_v19 = vld [vmem:[#allocation3 + $0x38] sm:$0xff]   ;;  %v49_v20 = vld [vmem:[%s5558_s0] sm:$0xff]  ;;  %v5070_v22 = vld [vmem:[#allocation3 + $0x80] sm:$0xff]  }
  0x2c   :  { %3856 = vmatprep.subr.bf16.mxu0 %v5178_v0  ;;  %v5268_v21 = vld [vmem:[%s5558_s0 + $0x8] sm:$0xff]  ;;  %v5071_v24 = vld [vmem:[#allocation3 + $0x88] sm:$0xff]   ;;  %v5072_v25 = vld [vmem:[#allocation3 + $0x90] sm:$0xff]  }
  0x2d   :  { %v51_v23 = vpack.c.bf16 %v5268_v21, %v49_v20  ;;  %v5073_v26 = vld [vmem:[#allocation3 + $0x98] sm:$0xff]   ;;  %v5074_v27 = vld [vmem:[#allocation3 + $0xa0] sm:$0xff]   ;;  %v5075_v28 = vld [vmem:[#allocation3 + $0xa8] sm:$0xff]  }
  0x2e   :  { %v5076_v29 = vld [vmem:[#allocation3 + $0xb0] sm:$0xff]   ;;  %v5077_v30 = vld [vmem:[#allocation3 + $0xb8] sm:$0xff]   ;;  %v5078_v34 = vld [vmem:[#allocation3 + $0xc0] sm:$0xff]  }
  0x2f   :  { %3857 = vmatpush3.bf16.msra.mxu0 %v5056_v3  ;;  %v265_v31 = vld [vmem:[%s5558_s0 + $0x2] sm:$0xff]  ;;  %v266_v32 = vld [vmem:[%s5558_s0 + $0xa] sm:$0xff]  ;;  %v5079_v35 = vld [vmem:[#allocation3 + $0xc8] sm:$0xff]  }
  0x30   :  { %3858 = vmatprep.subr.bf16.mxu0 %v5178_v0  ;;  %v267_v33 = vpack.c.bf16 %v266_v32, %v265_v31  ;;  %v5080_v36 = vld [vmem:[#allocation3 + $0xd0] sm:$0xff]   ;;  %v5081_v37 = vld [vmem:[#allocation3 + $0xd8] sm:$0xff]   ;;  %v5082_v38 = vld [vmem:[#allocation3 + $0xe0] sm:$0xff]  }
  0x31   :  { %v5083_v39 = vld [vmem:[#allocation3 + $0xe8] sm:$0xff]   ;;  %v5084_v40 = vld [vmem:[#allocation3 + $0xf0] sm:$0xff]   ;;  %v5085_v41 = vld [vmem:[#allocation3 + $0xf8] sm:$0xff]  }
  0x32   :  { %v375_v42 = vld [vmem:[%s5558_s0 + $0x3] sm:$0xff]  ;;  %v376_v43 = vld [vmem:[%s5558_s0 + $0xb] sm:$0xff]  ;;  %v5087_v46 = vld [vmem:[#allocation3 + $0x108] sm:$0xff]  }
  0x33   :  { %3859 = vmatpush3.bf16.msra.mxu0 %v5057_v4  ;;  %v377_v44 = vpack.c.bf16 %v376_v43, %v375_v42  ;;  %v5086_v45 = vld [vmem:[#allocation3 + $0x100] sm:$0xff]   ;;  %v5088_v47 = vld [vmem:[#allocation3 + $0x110] sm:$0xff]   ;;  %v5089_v48 = vld [vmem:[#allocation3 + $0x118] sm:$0xff]  }
  0x34   :  { %3860 = vmatprep.subr.bf16.mxu0 %v5178_v0  ;;  %v5090_v49 = vld [vmem:[#allocation3 + $0x120] sm:$0xff]   ;;  %v5091_v50 = vld [vmem:[#allocation3 + $0x128] sm:$0xff]   ;;  %v5092_v51 = vld [vmem:[#allocation3 + $0x130] sm:$0xff]  }
  0x35   :  { %v5093_v52 = vld [vmem:[#allocation3 + $0x138] sm:$0xff]   ;;  %v5094_v56 = vld [vmem:[#allocation3 + $0x140] sm:$0xff]   ;;  %v5095_v57 = vld [vmem:[#allocation3 + $0x148] sm:$0xff]  }
  0x36   :  { %v485_v53 = vld [vmem:[%s5558_s0 + $0x4] sm:$0xff]  ;;  %v486_v54 = vld [vmem:[%s5558_s0 + $0xc] sm:$0xff]  ;;  %v3393_v61 = vld [vmem:[#allocation5 + $0xc8] sm:$0xff]  }
  0x37   :  { %3861 = vmatpush3.bf16.msra.mxu0 %v5058_v5  ;;  %v487_v55 = vpack.c.bf16 %v486_v54, %v485_v53  ;;  %v3392_v58 = vld [vmem:[#allocation5 + $0xc0] sm:$0xff]   ;;  %v5096_v60 = vld [vmem:[#allocation3 + $0x150] sm:$0xff]   ;;  %v5097_v62 = vld [vmem:[#allocation3 + $0x158] sm:$0xff]  }
  0x38   :  { %3862 = vmatprep.subr.bf16.mxu0 %v5178_v0  ;;  %4673 = vmatpush3.bf16.msra.mxu1 %v3392_v58  ;;  %v3394_v63 = vld [vmem:[#allocation5 + $0xd0] sm:$0xff]   ;;  %v5098_v1 = vld [vmem:[#allocation3 + $0x160] sm:$0xff]   ;;  %v3395_v2 = vld [vmem:[#allocation5 + $0xd8] sm:$0xff]  }
  0x39   :  { %4674 = vmatprep.subr.bf16.mxu1 %v5180_v59  ;;  %v5099_v3 = vld [vmem:[#allocation3 + $0x168] sm:$0xff]   ;;  %v3396_v4 = vld [vmem:[#allocation5 + $0xe0] sm:$0xff]   ;;  %v5100_v5 = vld [vmem:[#allocation3 + $0x170] sm:$0xff]  }
  0x3a   :  { %v596_v9 = vld [vmem:[%s5558_s0 + $0xd] sm:$0xff] }
  0x3b   :  { %3863 = vmatpush3.bf16.msra.mxu0 %v5059_v6  ;;  %v3397_v6 = vld [vmem:[#allocation5 + $0xe8] sm:$0xff]   ;;  %v706_v20 = vld [vmem:[%s5558_s0 + $0xe] sm:$0xff] }
  0x3c   :  { %3864 = vmatprep.subr.bf16.mxu0 %v5178_v0  ;;  %4676 = vmatpush3.bf16.msra.mxu1 %v3393_v61  ;;  %v815_v31 = vld [vmem:[%s5558_s0 + $0x7] sm:$0xff]  ;;  %v816_v32 = vld [vmem:[%s5558_s0 + $0xf] sm:$0xff] }
  0x3d   :  { %4677 = vmatprep.subr.bf16.mxu1 %v5180_v59  ;;  %v926_v42 = vld [vmem:[%s5558_s0 + $0x10] sm:$0xff] }
  0x3e   :  { %v927_v43 = vpack.c.bf16 %v926_v42, %v5268_v21  ;;  %v3379_v21 = vld [vmem:[#allocation5 + $0x58] sm:$0xff]   ;;  %v3400_v58 = vld [vmem:[#allocation5 + $0x100] sm:$0xff]  }
  0x3f   :  { %3865 = vmatpush3.bf16.msra.mxu0 %v5060_v7  ;;  %v5101_v7 = vld [vmem:[#allocation3 + $0x178] sm:$0xff]   ;;  %v3424_v42 = vld [vmem:[#allocation5 + $0x1c0] sm:$0xff]  }
  0x40   :  { %3866 = vmatprep.subr.bf16.mxu0 %v5178_v0  ;;  %4679 = vmatpush3.bf16.msra.mxu1 %v3394_v63  ;;  %v3401_v63 = vld [vmem:[#allocation5 + $0x108] sm:$0xff]  }
  0x41   :  { %4680 = vmatprep.subr.bf16.mxu1 %v5180_v59 }
  0x43   :  { %3867 = vmatpush3.bf16.msra.mxu0 %v5061_v8  ;;  %v595_v8 = vld [vmem:[%s5558_s0 + $0x5] sm:$0xff] }
  0x44   :  { %3872 = vmatprep.subr.bf16.mxu0 %v5178_v0  ;;  %4682 = vmatpush3.bf16.msra.mxu1 %v3395_v2  ;;  %v597_v10 = vpack.c.bf16 %v596_v9, %v595_v8  ;;  %v3402_v2 = vld [vmem:[#allocation5 + $0x110] sm:$0xff]   ;;  %v3405_v8 = vld [vmem:[#allocation5 + $0x128] sm:$0xff]  }
  0x45   :  { %4683 = vmatprep.subr.bf16.mxu1 %v5180_v59  ;;  %v3374_v9 = vld [vmem:[#allocation5 + $0x30] sm:$0xff]  }
  0x46   :  { %3869 = vmatmul.mubr.bf16.vlgmr.msra.gmra.mrb[0].mxu0 %v70_v11  ;;  %v5102_v11 = vld [vmem:[#allocation3 + $0x180] sm:$0xff]  }
  0x47   :  { %3873 = vmatpush3.bf16.msra.mxu0 %v5062_v12  ;;  %3888 = vmatprep.mubr.msk.bf16.mxu0 %vm5179_vm0, %v5178_v0  ;;  %v5103_v12 = vld [vmem:[#allocation3 + $0x188] sm:$0xff]  }
  0x48   :  { %3874 = vmatprep.subr.bf16.mxu0 %v5178_v0  ;;  %4685 = vmatpush3.bf16.msra.mxu1 %v3396_v4  ;;  %v3403_v4 = vld [vmem:[#allocation5 + $0x118] sm:$0xff]  }
  0x49   :  { %4686 = vmatprep.subr.bf16.mxu1 %v5180_v59 }
  0x4b   :  { %3875 = vmatpush3.bf16.msra.mxu0 %v5063_v13  ;;  %v5104_v13 = vld [vmem:[#allocation3 + $0x190] sm:$0xff]  }
  0x4c   :  { %3876 = vmatprep.subr.bf16.mxu0 %v5178_v0  ;;  %4688 = vmatpush3.bf16.msra.mxu1 %v3397_v6  ;;  %v3404_v6 = vld [vmem:[#allocation5 + $0x120] sm:$0xff]  }
  0x4d   :  { %4689 = vmatprep.subr.bf16.mxu1 %v5180_v59 }
  0x4f   :  { %3877 = vmatpush3.bf16.msra.mxu0 %v5064_v14  ;;  %v5105_v14 = vld [vmem:[#allocation3 + $0x198] sm:$0xff]  }
  0x50   :  { %3878 = vmatprep.subr.bf16.mxu0 %v5178_v0 }
  0x53   :  { %3879 = vmatpush3.bf16.msra.mxu0 %v5065_v15  ;;  %v5106_v15 = vld [vmem:[#allocation3 + $0x1a0] sm:$0xff]  }
  0x54   :  { %3880 = vmatprep.subr.bf16.mxu0 %v5178_v0 }
  0x57   :  { %3881 = vmatpush3.bf16.msra.mxu0 %v5066_v16  ;;  %v5107_v16 = vld [vmem:[#allocation3 + $0x1a8] sm:$0xff]  }
  0x58   :  { %3882 = vmatprep.subr.bf16.mxu0 %v5178_v0 }
  0x5b   :  { %3883 = vmatpush3.bf16.msra.mxu0 %v5067_v17  ;;  %v5108_v17 = vld [vmem:[#allocation3 + $0x1b0] sm:$0xff]  }
  0x5c   :  { %3884 = vmatprep.subr.bf16.mxu0 %v5178_v0 }
  0x5f   :  { %3885 = vmatpush3.bf16.msra.mxu0 %v5068_v18  ;;  %v5109_v18 = vld [vmem:[#allocation3 + $0x1b8] sm:$0xff]  }
  0x60   :  { %3886 = vmatprep.subr.bf16.mxu0 %v5178_v0 }
  0x63   :  { %3887 = vmatpush3.bf16.msra.mxu0 %v5069_v19  ;;  %v705_v19 = vld [vmem:[%s5558_s0 + $0x6] sm:$0xff] }
  0x64   :  { %3892 = vmatprep.subr.bf16.mxu0 %v5178_v0 }
  0x66   :  { %3889 = vmatmul.mubr.bf16.vlgmr.msra.gmra.mrb[0].mxu0 %v51_v23  ;;  %v5110_v23 = vld [vmem:[#allocation3 + $0x1c0] sm:$0xff]  }
  0x67   :  { %3893 = vmatpush3.bf16.msra.mxu0 %v5070_v22  ;;  %3908 = vmatprep.mubr.msk.bf16.mxu0 %vm5179_vm0, %v5178_v0  ;;  %v707_v22 = vpack.c.bf16 %v706_v20, %v705_v19  ;;  %v3386_v19 = vld [vmem:[#allocation5 + $0x90] sm:$0xff]  }
  0x68   :  { %3894 = vmatprep.subr.bf16.mxu0 %v5178_v0  ;;  %v3410_v20 = vld [vmem:[#allocation5 + $0x150] sm:$0xff]  }
  0x6b   :  { %3895 = vmatpush3.bf16.msra.mxu0 %v5071_v24  ;;  %v5111_v24 = vld [vmem:[#allocation3 + $0x1c8] sm:$0xff]  }
  0x6c   :  { %3896 = vmatprep.subr.bf16.mxu0 %v5178_v0 }
  0x6f   :  { %3897 = vmatpush3.bf16.msra.mxu0 %v5072_v25  ;;  %v5112_v25 = vld [vmem:[#allocation3 + $0x1d0] sm:$0xff]  }
  0x70   :  { %3898 = vmatprep.subr.bf16.mxu0 %v5178_v0 }
  0x73   :  { %3899 = vmatpush3.bf16.msra.mxu0 %v5073_v26  ;;  %v5113_v26 = vld [vmem:[#allocation3 + $0x1d8] sm:$0xff]  }
  0x74   :  { %3900 = vmatprep.subr.bf16.mxu0 %v5178_v0 }
  0x77   :  { %3901 = vmatpush3.bf16.msra.mxu0 %v5074_v27  ;;  %v5114_v27 = vld [vmem:[#allocation3 + $0x1e0] sm:$0xff]  }
  0x78   :  { %3902 = vmatprep.subr.bf16.mxu0 %v5178_v0 }
  0x7b   :  { %3903 = vmatpush3.bf16.msra.mxu0 %v5075_v28  ;;  %v5115_v28 = vld [vmem:[#allocation3 + $0x1e8] sm:$0xff]  }
  0x7c   :  { %3904 = vmatprep.subr.bf16.mxu0 %v5178_v0 }
  0x7f   :  { %3905 = vmatpush3.bf16.msra.mxu0 %v5076_v29  ;;  %v5116_v29 = vld [vmem:[#allocation3 + $0x1f0] sm:$0xff]  }
  0x80   :  { %3906 = vmatprep.subr.bf16.mxu0 %v5178_v0 }
  0x83   :  { %3907 = vmatpush3.bf16.msra.mxu0 %v5077_v30  ;;  %v5117_v30 = vld [vmem:[#allocation3 + $0x1f8] sm:$0xff]  }
  0x84   :  { %3912 = vmatprep.subr.bf16.mxu0 %v5178_v0 }
  0x86   :  { %3909 = vmatmul.mubr.bf16.vlgmr.msra.gmra.mrb[0].mxu0 %v267_v33  ;;  %v817_v33 = vpack.c.bf16 %v816_v32, %v815_v31  ;;  %v3415_v31 = vld [vmem:[#allocation5 + $0x178] sm:$0xff]   ;;  %v3416_v32 = vld [vmem:[#allocation5 + $0x180] sm:$0xff]  }
  0x87   :  { %3913 = vmatpush3.bf16.msra.mxu0 %v5078_v34  ;;  %3928 = vmatprep.mubr.msk.bf16.mxu0 %vm5179_vm0, %v5178_v0  ;;  %v5118_v34 = vld [vmem:[#allocation3 + $0x200] sm:$0xff]  }
  0x88   :  { %3914 = vmatprep.subr.bf16.mxu0 %v5178_v0 }
  0x8b   :  { %3915 = vmatpush3.bf16.msra.mxu0 %v5079_v35  ;;  %v5119_v35 = vld [vmem:[#allocation3 + $0x208] sm:$0xff]  }
  0x8c   :  { %3916 = vmatprep.subr.bf16.mxu0 %v5178_v0 }
  0x8f   :  { %3917 = vmatpush3.bf16.msra.mxu0 %v5080_v36  ;;  %v5120_v36 = vld [vmem:[#allocation3 + $0x210] sm:$0xff]  }
  0x90   :  { %3918 = vmatprep.subr.bf16.mxu0 %v5178_v0 }
  0x93   :  { %3919 = vmatpush3.bf16.msra.mxu0 %v5081_v37  ;;  %v5121_v37 = vld [vmem:[#allocation3 + $0x218] sm:$0xff]  }
  0x94   :  { %3920 = vmatprep.subr.bf16.mxu0 %v5178_v0 }
  0x97   :  { %3921 = vmatpush3.bf16.msra.mxu0 %v5082_v38  ;;  %v5122_v38 = vld [vmem:[#allocation3 + $0x220] sm:$0xff]  }
  0x98   :  { %3922 = vmatprep.subr.bf16.mxu0 %v5178_v0 }
  0x9b   :  { %3923 = vmatpush3.bf16.msra.mxu0 %v5083_v39  ;;  %v5123_v39 = vld [vmem:[#allocation3 + $0x228] sm:$0xff]  }
  0x9c   :  { %3924 = vmatprep.subr.bf16.mxu0 %v5178_v0 }
  0x9f   :  { %3925 = vmatpush3.bf16.msra.mxu0 %v5084_v40  ;;  %v5124_v40 = vld [vmem:[#allocation3 + $0x230] sm:$0xff]  }
  0xa0   :  { %3926 = vmatprep.subr.bf16.mxu0 %v5178_v0 }
  0xa3   :  { %3927 = vmatpush3.bf16.msra.mxu0 %v5085_v41  ;;  %v5125_v41 = vld [vmem:[#allocation3 + $0x238] sm:$0xff]  }
  0xa4   :  { %3932 = vmatprep.subr.bf16.mxu0 %v5178_v0 }
  0xa6   :  { %3929 = vmatmul.mubr.bf16.vlgmr.msra.gmra.mrb[0].mxu0 %v377_v44  ;;  %v3376_v44 = vld [vmem:[#allocation5 + $0x40] sm:$0xff]  }
  0xa7   :  { %3933 = vmatpush3.bf16.msra.mxu0 %v5086_v45  ;;  %3948 = vmatprep.mubr.msk.bf16.mxu0 %vm5179_vm0, %v5178_v0  ;;  %v3377_v45 = vld [vmem:[#allocation5 + $0x48] sm:$0xff]  }
  0xa8   :  { %3934 = vmatprep.subr.bf16.mxu0 %v5178_v0 }
  0xab   :  { %3935 = vmatpush3.bf16.msra.mxu0 %v5087_v46  ;;  %v3378_v46 = vld [vmem:[#allocation5 + $0x50] sm:$0xff]  }
  0xac   :  { %3936 = vmatprep.subr.bf16.mxu0 %v5178_v0 }
  0xaf   :  { %3937 = vmatpush3.bf16.msra.mxu0 %v5088_v47  ;;  %v3380_v47 = vld [vmem:[#allocation5 + $0x60] sm:$0xff]  }
  0xb0   :  { %3938 = vmatprep.subr.bf16.mxu0 %v5178_v0 }
  0xb3   :  { %3939 = vmatpush3.bf16.msra.mxu0 %v5089_v48  ;;  %v3381_v48 = vld [vmem:[#allocation5 + $0x68] sm:$0xff]  }
  0xb4   :  { %3940 = vmatprep.subr.bf16.mxu0 %v5178_v0 }
  0xb7   :  { %3941 = vmatpush3.bf16.msra.mxu0 %v5090_v49  ;;  %v3382_v49 = vld [vmem:[#allocation5 + $0x70] sm:$0xff]  }
  0xb8   :  { %3942 = vmatprep.subr.bf16.mxu0 %v5178_v0 }
  0xbb   :  { %3943 = vmatpush3.bf16.msra.mxu0 %v5091_v50  ;;  %v3398_v50 = vld [vmem:[#allocation5 + $0xf0] sm:$0xff]  }
  0xbc   :  { %3944 = vmatprep.subr.bf16.mxu0 %v5178_v0  ;;  %4691 = vmatpush3.bf16.msra.mxu1 %v3398_v50  ;;  %v3432_v50 = vld [vmem:[#allocation5 + $0x200] sm:$0xff]  }
  0xbd   :  { %4692 = vmatprep.subr.bf16.mxu1 %v5180_v59 }
  0xbf   :  { %3945 = vmatpush3.bf16.msra.mxu0 %v5092_v51  ;;  %v3383_v51 = vld [vmem:[#allocation5 + $0x78] sm:$0xff]  }
  0xc0   :  { %3946 = vmatprep.subr.bf16.mxu0 %v5178_v0 }
  0xc3   :  { %3947 = vmatpush3.bf16.msra.mxu0 %v5093_v52  ;;  %v3399_v52 = vld [vmem:[#allocation5 + $0xf8] sm:$0xff]  }
  0xc4   :  { %3952 = vmatprep.subr.bf16.mxu0 %v5178_v0  ;;  %4694 = vmatpush3.bf16.msra.mxu1 %v3399_v52  ;;  %v3433_v52 = vld [vmem:[#allocation5 + $0x208] sm:$0xff]  }
  0xc5   :  { %4695 = vmatprep.subr.bf16.mxu1 %v5180_v59 }
  0xc6   :  { %3949 = vmatmul.mubr.bf16.vlgmr.msra.gmra.mrb[0].mxu0 %v487_v55 }
  0xc7   :  { %3953 = vmatpush3.bf16.msra.mxu0 %v5094_v56  ;;  %3968 = vmatprep.mubr.msk.bf16.mxu0 %vm5179_vm0, %v5178_v0 }
  0xc8   :  { %3954 = vmatprep.subr.bf16.mxu0 %v5178_v0 }
  0xcb   :  { %3955 = vmatpush3.bf16.msra.mxu0 %v5095_v57  ;;  %v2858_v57 = vld [vmem:[#allocation5] sm:$0xff]  }
  0xcc   :  { %3956 = vmatprep.subr.bf16.mxu0 %v5178_v0 }
  0xcf   :  { %3957 = vmatpush3.bf16.msra.mxu0 %v5096_v60 }
  0xd0   :  { %3958 = vmatprep.subr.bf16.mxu0 %v5178_v0 }
  0xd3   :  { %3959 = vmatpush3.bf16.msra.mxu0 %v5097_v62  ;;  %v3369_v62 = vld [vmem:[#allocation5 + $0x8] sm:$0xff]  }
  0xd4   :  { %3960 = vmatprep.subr.bf16.mxu0 %v5178_v0 }
  0xd7   :  { %3961 = vmatpush3.bf16.msra.mxu0 %v5098_v1  ;;  %v3370_v1 = vld [vmem:[#allocation5 + $0x10] sm:$0xff]  }
  0xd8   :  { %3962 = vmatprep.subr.bf16.mxu0 %v5178_v0 }
  0xdb   :  { %3963 = vmatpush3.bf16.msra.mxu0 %v5099_v3  ;;  %v3371_v3 = vld [vmem:[#allocation5 + $0x18] sm:$0xff]  }
  0xdc   :  { %3964 = vmatprep.subr.bf16.mxu0 %v5178_v0 }
  0xdf   :  { %3965 = vmatpush3.bf16.msra.mxu0 %v5100_v5  ;;  %v3372_v5 = vld [vmem:[#allocation5 + $0x20] sm:$0xff]  }
  0xe0   :  { %3966 = vmatprep.subr.bf16.mxu0 %v5178_v0 }
  0xe3   :  { %3967 = vmatpush3.bf16.msra.mxu0 %v5101_v7  ;;  %v3373_v7 = vld [vmem:[#allocation5 + $0x28] sm:$0xff]  }
  0xe4   :  { %3972 = vmatprep.subr.bf16.mxu0 %v5178_v0 }
  0xe6   :  { %3969 = vmatmul.mubr.bf16.vlgmr.msra.gmra.mrb[0].mxu0 %v597_v10  ;;  %v3406_v10 = vld [vmem:[#allocation5 + $0x130] sm:$0xff]  }
  0xe7   :  { %3973 = vmatpush3.bf16.msra.mxu0 %v5102_v11  ;;  %3988 = vmatprep.mubr.msk.bf16.mxu0 %vm5179_vm0, %v5178_v0  ;;  %v3375_v11 = vld [vmem:[#allocation5 + $0x38] sm:$0xff]  }
  0xe8   :  { %3974 = vmatprep.subr.bf16.mxu0 %v5178_v0 }
  0xeb   :  { %3975 = vmatpush3.bf16.msra.mxu0 %v5103_v12  ;;  %v3407_v12 = vld [vmem:[#allocation5 + $0x138] sm:$0xff]  }
  0xec   :  { %3976 = vmatprep.subr.bf16.mxu0 %v5178_v0 }
  0xef   :  { %3977 = vmatpush3.bf16.msra.mxu0 %v5104_v13  ;;  %v3384_v13 = vld [vmem:[#allocation5 + $0x80] sm:$0xff]  }
  0xf0   :  { %3978 = vmatprep.subr.bf16.mxu0 %v5178_v0 }
  0xf3   :  { %3979 = vmatpush3.bf16.msra.mxu0 %v5105_v14  ;;  %v3408_v14 = vld [vmem:[#allocation5 + $0x140] sm:$0xff]  }
  0xf4   :  { %3980 = vmatprep.subr.bf16.mxu0 %v5178_v0 }
  0xf7   :  { %3981 = vmatpush3.bf16.msra.mxu0 %v5106_v15 }
  0xf8   :  { %3982 = vmatprep.subr.bf16.mxu0 %v5178_v0 }
  0xfb   :  { %3983 = vmatpush3.bf16.msra.mxu0 %v5107_v16 }
  0xfc   :  { %3984 = vmatprep.subr.bf16.mxu0 %v5178_v0 }
  0xff   :  { %3985 = vmatpush3.bf16.msra.mxu0 %v5108_v17  ;;  %v3385_v17 = vld [vmem:[#allocation5 + $0x88] sm:$0xff]  }
 0x100   :  { %3986 = vmatprep.subr.bf16.mxu0 %v5178_v0 }
 0x103   :  { %3987 = vmatpush3.bf16.msra.mxu0 %v5109_v18  ;;  %v3409_v18 = vld [vmem:[#allocation5 + $0x148] sm:$0xff]  }
 0x104   :  { %3992 = vmatprep.subr.bf16.mxu0 %v5178_v0 }
 0x106   :  { %3989 = vmatmul.mubr.bf16.vlgmr.msra.gmra.mrb[0].mxu0 %v707_v22  ;;  %v3387_v22 = vld [vmem:[#allocation5 + $0x98] sm:$0xff]  }
 0x107   :  { %3993 = vmatpush3.bf16.msra.mxu0 %v5110_v23  ;;  %4008 = vmatprep.mubr.msk.bf16.mxu0 %vm5179_vm0, %v5178_v0  ;;  %v3411_v23 = vld [vmem:[#allocation5 + $0x158] sm:$0xff]  }
 0x108   :  { %3994 = vmatprep.subr.bf16.mxu0 %v5178_v0 }
 0x10b   :  { %3995 = vmatpush3.bf16.msra.mxu0 %v5111_v24  ;;  %v3388_v24 = vld [vmem:[#allocation5 + $0xa0] sm:$0xff]  }
 0x10c   :  { %3996 = vmatprep.subr.bf16.mxu0 %v5178_v0 }
 0x10f   :  { %3997 = vmatpush3.bf16.msra.mxu0 %v5112_v25  ;;  %v3412_v25 = vld [vmem:[#allocation5 + $0x160] sm:$0xff]  }
 0x110   :  { %3998 = vmatprep.subr.bf16.mxu0 %v5178_v0 }
 0x113   :  { %3999 = vmatpush3.bf16.msra.mxu0 %v5113_v26  ;;  %v3389_v26 = vld [vmem:[#allocation5 + $0xa8] sm:$0xff]  }
 0x114   :  { %4000 = vmatprep.subr.bf16.mxu0 %v5178_v0 }
 0x117   :  { %4001 = vmatpush3.bf16.msra.mxu0 %v5114_v27  ;;  %v3413_v27 = vld [vmem:[#allocation5 + $0x168] sm:$0xff]  }
 0x118   :  { %4002 = vmatprep.subr.bf16.mxu0 %v5178_v0 }
 0x11b   :  { %4003 = vmatpush3.bf16.msra.mxu0 %v5115_v28  ;;  %v3390_v28 = vld [vmem:[#allocation5 + $0xb0] sm:$0xff]  }
 0x11c   :  { %4004 = vmatprep.subr.bf16.mxu0 %v5178_v0 }
 0x11f   :  { %4005 = vmatpush3.bf16.msra.mxu0 %v5116_v29  ;;  %v3414_v29 = vld [vmem:[#allocation5 + $0x170] sm:$0xff]  }
 0x120   :  { %4006 = vmatprep.subr.bf16.mxu0 %v5178_v0 }
 0x123   :  { %4007 = vmatpush3.bf16.msra.mxu0 %v5117_v30  ;;  %v3391_v30 = vld [vmem:[#allocation5 + $0xb8] sm:$0xff]  }
 0x124   :  { %4012 = vmatprep.subr.bf16.mxu0 %v5178_v0 }
 0x126   :  { %4009 = vmatmul.mubr.bf16.vlgmr.msra.gmra.mrb[0].mxu0 %v817_v33 }
 0x127   :  { %4013 = vmatpush3.bf16.msra.mxu0 %v5118_v34  ;;  %4028 = vmatprep.mubr.msk.bf16.mxu0 %vm5179_vm0, %v5178_v0 }
 0x128   :  { %4014 = vmatprep.subr.bf16.mxu0 %v5178_v0 }
 0x12b   :  { %4015 = vmatpush3.bf16.msra.mxu0 %v5119_v35  ;;  %v3417_v35 = vld [vmem:[#allocation5 + $0x188] sm:$0xff]  }
 0x12c   :  { %4016 = vmatprep.subr.bf16.mxu0 %v5178_v0 }
 0x12f   :  { %4017 = vmatpush3.bf16.msra.mxu0 %v5120_v36  ;;  %v3418_v36 = vld [vmem:[#allocation5 + $0x190] sm:$0xff]  }
 0x130   :  { %4018 = vmatprep.subr.bf16.mxu0 %v5178_v0 }
 0x133   :  { %4019 = vmatpush3.bf16.msra.mxu0 %v5121_v37  ;;  %v3419_v37 = vld [vmem:[#allocation5 + $0x198] sm:$0xff]  }
 0x134   :  { %4020 = vmatprep.subr.bf16.mxu0 %v5178_v0 }
 0x137   :  { %4021 = vmatpush3.bf16.msra.mxu0 %v5122_v38  ;;  %v3420_v38 = vld [vmem:[#allocation5 + $0x1a0] sm:$0xff]  }
 0x138   :  { %4022 = vmatprep.subr.bf16.mxu0 %v5178_v0 }
 0x13b   :  { %4023 = vmatpush3.bf16.msra.mxu0 %v5123_v39  ;;  %v3421_v39 = vld [vmem:[#allocation5 + $0x1a8] sm:$0xff]  }
 0x13c   :  { %4024 = vmatprep.subr.bf16.mxu0 %v5178_v0 }
 0x13f   :  { %4025 = vmatpush3.bf16.msra.mxu0 %v5124_v40  ;;  %v3422_v40 = vld [vmem:[#allocation5 + $0x1b0] sm:$0xff]  }
 0x140   :  { %4026 = vmatprep.subr.bf16.mxu0 %v5178_v0 }
 0x143   :  { %4027 = vmatpush3.bf16.msra.mxu0 %v5125_v41  ;;  %v3423_v41 = vld [vmem:[#allocation5 + $0x1b8] sm:$0xff]  }
 0x144   :  { %4599 = vmatprep.subr.bf16.mxu0 %v5180_v59 }
 0x146   :  { %4029 = vmatmul.mubr.bf16.vlgmr.msra.gmra.mrb[0].mxu0 %v927_v43 }
 0x147   :  { %4601 = vmatpush3.bf16.msra.mxu0 %v3376_v44  ;;  %4064 = vmatprep.mubr.msk.f32.mxu0 %vm5179_vm0, %v5178_v0  ;;  %v3425_v44 = vld [vmem:[#allocation5 + $0x1c8] sm:$0xff]  }
 0x148   :  { %4602 = vmatprep.subr.bf16.mxu0 %v5180_v59 }
 0x14b   :  { %4604 = vmatpush3.bf16.msra.mxu0 %v3377_v45  ;;  %v3426_v45 = vld [vmem:[#allocation5 + $0x1d0] sm:$0xff]  }
 0x14c   :  { %4605 = vmatprep.subr.bf16.mxu0 %v5180_v59 }
 0x14f   :  { %4607 = vmatpush3.bf16.msra.mxu0 %v3378_v46  ;;  %v3427_v46 = vld [vmem:[#allocation5 + $0x1d8] sm:$0xff]  }
 0x150   :  { %4608 = vmatprep.subr.bf16.mxu0 %v5180_v59 }
 0x153   :  { %4610 = vmatpush3.bf16.msra.mxu0 %v3379_v21  ;;  %v3428_v21 = vld [vmem:[#allocation5 + $0x1e0] sm:$0xff]  }
 0x154   :  { %4611 = vmatprep.subr.bf16.mxu0 %v5180_v59 }
 0x157   :  { %4613 = vmatpush3.bf16.msra.mxu0 %v3380_v47  ;;  %v3429_v47 = vld [vmem:[#allocation5 + $0x1e8] sm:$0xff]  }
 0x158   :  { %4614 = vmatprep.subr.bf16.mxu0 %v5180_v59 }
 0x15b   :  { %4616 = vmatpush3.bf16.msra.mxu0 %v3381_v48  ;;  %v3430_v48 = vld [vmem:[#allocation5 + $0x1f0] sm:$0xff]  }
 0x15c   :  { %4617 = vmatprep.subr.bf16.mxu0 %v5180_v59 }
 0x15f   :  { %4619 = vmatpush3.bf16.msra.mxu0 %v3382_v49  ;;  %v3431_v49 = vld [vmem:[#allocation5 + $0x1f8] sm:$0xff]  }
 0x160   :  { %4620 = vmatprep.subr.bf16.mxu0 %v5180_v59 }
 0x163   :  { %4622 = vmatpush3.bf16.msra.mxu0 %v3383_v51 }
 0x164   :  { %4623 = vmatprep.subr.bf16.mxu0 %v5180_v59 }
 0x219   :  { %v1026_v53 = vpop.f32.mrb[0].mxu0 }
 0x21a   :  { %1035 = vst [vmem:[#allocation2] sm:$0xff] %v1026_v53  ;;  %v4030_v54 = vpop.f32.mrb[1].mxu0  ;;  %v3434_v53 = vld [vmem:[#allocation5 + $0x210] sm:$0xff]  }
 0x21b   :  { %v1029_v55 = vpop.f32.mrb[2].mxu0  ;;  %v3435_v54 = vld [vmem:[#allocation5 + $0x218] sm:$0xff]  }
 0x21c   :  { %1036 = vst [vmem:[#allocation2 + $0x8] sm:$0xff] %v1029_v55  ;;  %v4031_v56 = vpop.f32.mrb[3].mxu0  ;;  %v3436_v55 = vld [vmem:[#allocation5 + $0x220] sm:$0xff]  }
 0x21d   :  { %v3437_v56 = vld [vmem:[#allocation5 + $0x228] sm:$0xff]  }
 0x221   :  { %v1070_v60 = vld [vmem:[#allocation2 + $0x1] sm:$0x1]  ;;  %v1347_v61 = vld [vmem:[#allocation2 + $0x3] sm:$0x1]  ;;  %v1037_v15 = vld [vmem:[#allocation2] sm:$0x1] }
 0x222   :  { %4065 = vmatmul.mubr.f32.vlgmr.msra.gmra.mrb[4].mxu0 %v1070_v60  ;;  %4170 = vmatmul.mubr.f32.vlgmr.msra.gmra.mrb[0].mxu1 %v1347_v61  ;;  %v1451_v16 = vld [vmem:[#allocation2 + $0x4] sm:$0x1]  ;;  %v1243_v33 = vld [vmem:[#allocation2 + $0x2] sm:$0x1]  ;;  %v1555_v34 = vld [vmem:[#allocation2 + $0x5] sm:$0x1] }
 0x223   :  { %4625 = vmatpush3.bf16.msra.mxu0 %v2858_v57  ;;  %4697 = vmatpush3.bf16.msra.mxu1 %v3400_v58  ;;  %v1659_v43 = vld [vmem:[#allocation2 + $0x6] sm:$0x1]  ;;  %v1763_v51 = vld [vmem:[#allocation2 + $0x7] sm:$0x1]  ;;  %v3439_v58 = vld [vmem:[#allocation5 + $0x238] sm:$0xff]  }
 0x224   :  { %4626 = vmatprep.subr.bf16.mxu0 %v5180_v59  ;;  %4698 = vmatprep.subr.bf16.mxu1 %v5180_v59  ;;  %v3438_v57 = vld [vmem:[#allocation5 + $0x230] sm:$0xff]   ;;  %v3440_v60 = vld [vmem:[#allocation5 + $0x240] sm:$0xff]   ;;  %v1867_v61 = vld [vmem:[#allocation2 + $0x8] sm:$0x1] }
 0x225   :  { %4099 = vmatprep.mubr.msk.f32.mxu0 %vm5179_vm0, %v5178_v0  ;;  %4204 = vmatprep.mubr.msk.f32.mxu1 %vm5179_vm0, %v5178_v0 }
 0x227   :  { %4628 = vmatpush3.bf16.msra.mxu0 %v3369_v62  ;;  %4700 = vmatpush3.bf16.msra.mxu1 %v3401_v63  ;;  %v3441_v62 = vld [vmem:[#allocation5 + $0x248] sm:$0xff]   ;;  %v3442_v63 = vld [vmem:[#allocation5 + $0x250] sm:$0xff]  }
 0x228   :  { %4629 = vmatprep.subr.bf16.mxu0 %v5180_v59  ;;  %4701 = vmatprep.subr.bf16.mxu1 %v5180_v59 }
 0x22b   :  { %4631 = vmatpush3.bf16.msra.mxu0 %v3370_v1  ;;  %4703 = vmatpush3.bf16.msra.mxu1 %v3402_v2  ;;  %v3443_v1 = vld [vmem:[#allocation5 + $0x258] sm:$0xff]   ;;  %v3444_v2 = vld [vmem:[#allocation5 + $0x260] sm:$0xff]  }
 0x22c   :  { %4632 = vmatprep.subr.bf16.mxu0 %v5180_v59  ;;  %4704 = vmatprep.subr.bf16.mxu1 %v5180_v59 }
 0x22f   :  { %4634 = vmatpush3.bf16.msra.mxu0 %v3371_v3  ;;  %4706 = vmatpush3.bf16.msra.mxu1 %v3403_v4  ;;  %v3445_v3 = vld [vmem:[#allocation5 + $0x268] sm:$0xff]   ;;  %v3446_v4 = vld [vmem:[#allocation5 + $0x270] sm:$0xff]  }
 0x230   :  { %4635 = vmatprep.subr.bf16.mxu0 %v5180_v59  ;;  %4707 = vmatprep.subr.bf16.mxu1 %v5180_v59 }
 0x233   :  { %4637 = vmatpush3.bf16.msra.mxu0 %v3372_v5  ;;  %4709 = vmatpush3.bf16.msra.mxu1 %v3404_v6  ;;  %v3447_v5 = vld [vmem:[#allocation5 + $0x278] sm:$0xff]   ;;  %v3448_v6 = vld [vmem:[#allocation5 + $0x280] sm:$0xff]  }
 0x234   :  { %4638 = vmatprep.subr.bf16.mxu0 %v5180_v59  ;;  %4710 = vmatprep.subr.bf16.mxu1 %v5180_v59 }
 0x237   :  { %4640 = vmatpush3.bf16.msra.mxu0 %v3373_v7  ;;  %4712 = vmatpush3.bf16.msra.mxu1 %v3405_v8  ;;  %v1971_v7 = vld [vmem:[#allocation2 + $0x9] sm:$0x1]  ;;  %v3449_v8 = vld [vmem:[#allocation5 + $0x288] sm:$0xff]  }
 0x238   :  { %4641 = vmatprep.subr.bf16.mxu0 %v5180_v59  ;;  %4713 = vmatprep.subr.bf16.mxu1 %v5180_v59 }
 0x23b   :  { %4643 = vmatpush3.bf16.msra.mxu0 %v3374_v9  ;;  %4715 = vmatpush3.bf16.msra.mxu1 %v3406_v10  ;;  %v3450_v9 = vld [vmem:[#allocation5 + $0x290] sm:$0xff]   ;;  %v3451_v10 = vld [vmem:[#allocation5 + $0x298] sm:$0xff]  }
 0x23c   :  { %4644 = vmatprep.subr.bf16.mxu0 %v5180_v59  ;;  %4716 = vmatprep.subr.bf16.mxu1 %v5180_v59 }
 0x23f   :  { %4646 = vmatpush3.bf16.msra.mxu0 %v3375_v11  ;;  %4718 = vmatpush3.bf16.msra.mxu1 %v3407_v12  ;;  %v3452_v11 = vld [vmem:[#allocation5 + $0x2a0] sm:$0xff]   ;;  %v3453_v12 = vld [vmem:[#allocation5 + $0x2a8] sm:$0xff]  }
 0x240   :  { %4647 = vmatprep.subr.bf16.mxu0 %v5180_v59  ;;  %4719 = vmatprep.subr.bf16.mxu1 %v5180_v59 }
 0x242   :  { %4100 = vmatmul.mubr.f32.vlgmr.msra.gmra.mrb[4].mxu0 %v1037_v15  ;;  %4205 = vmatmul.mubr.f32.vlgmr.msra.gmra.mrb[0].mxu1 %v1451_v16  ;;  %v3456_v15 = vld [vmem:[#allocation5 + $0x2c0] sm:$0xff]   ;;  %v2075_v16 = vld [vmem:[#allocation2 + $0xa] sm:$0x1] }
 0x243   :  { %4649 = vmatpush3.bf16.msra.mxu0 %v3384_v13  ;;  %4721 = vmatpush3.bf16.msra.mxu1 %v3408_v14  ;;  %v3454_v13 = vld [vmem:[#allocation5 + $0x2b0] sm:$0xff]   ;;  %v3455_v14 = vld [vmem:[#allocation5 + $0x2b8] sm:$0xff]  }
 0x244   :  { %4650 = vmatprep.subr.bf16.mxu0 %v5180_v59  ;;  %4722 = vmatprep.subr.bf16.mxu1 %v5180_v59 }
 0x245   :  { %4134 = vmatprep.mubr.msk.f32.mxu0 %vm5179_vm0, %v5178_v0  ;;  %4239 = vmatprep.mubr.msk.f32.mxu1 %vm5179_vm0, %v5178_v0 }
 0x247   :  { %4652 = vmatpush3.bf16.msra.mxu0 %v3385_v17  ;;  %4724 = vmatpush3.bf16.msra.mxu1 %v3409_v18  ;;  %v3457_v17 = vld [vmem:[#allocation5 + $0x2c8] sm:$0xff]   ;;  %v3458_v18 = vld [vmem:[#allocation5 + $0x2d0] sm:$0xff]  }
 0x248   :  { %4653 = vmatprep.subr.bf16.mxu0 %v5180_v59  ;;  %4725 = vmatprep.subr.bf16.mxu1 %v5180_v59 }
 0x24b   :  { %4655 = vmatpush3.bf16.msra.mxu0 %v3386_v19  ;;  %4727 = vmatpush3.bf16.msra.mxu1 %v3410_v20  ;;  %v3459_v19 = vld [vmem:[#allocation5 + $0x2d8] sm:$0xff]   ;;  %v3460_v20 = vld [vmem:[#allocation5 + $0x2e0] sm:$0xff]  }
 0x24c   :  { %4656 = vmatprep.subr.bf16.mxu0 %v5180_v59  ;;  %4728 = vmatprep.subr.bf16.mxu1 %v5180_v59 }
 0x24f   :  { %4658 = vmatpush3.bf16.msra.mxu0 %v3387_v22  ;;  %4730 = vmatpush3.bf16.msra.mxu1 %v3411_v23  ;;  %v3461_v22 = vld [vmem:[#allocation5 + $0x2e8] sm:$0xff]   ;;  %v3462_v23 = vld [vmem:[#allocation5 + $0x2f0] sm:$0xff]  }
 0x250   :  { %4659 = vmatprep.subr.bf16.mxu0 %v5180_v59  ;;  %4731 = vmatprep.subr.bf16.mxu1 %v5180_v59 }
 0x253   :  { %4661 = vmatpush3.bf16.msra.mxu0 %v3388_v24  ;;  %4733 = vmatpush3.bf16.msra.mxu1 %v3412_v25  ;;  %v3463_v24 = vld [vmem:[#allocation5 + $0x2f8] sm:$0xff]   ;;  %v2700_v25 = vld [vmem:[%s5561_s3] sm:$0xff] }
 0x254   :  { %4662 = vmatprep.subr.bf16.mxu0 %v5180_v59  ;;  %4734 = vmatprep.subr.bf16.mxu1 %v5180_v59 }
 0x257   :  { %4664 = vmatpush3.bf16.msra.mxu0 %v3389_v26  ;;  %4736 = vmatpush3.bf16.msra.mxu1 %v3413_v27  ;;  %v2701_v26 = vld [vmem:[%s5561_s3 + $0x8] sm:$0xff]  ;;  %v3464_v27 = vld [vmem:[#allocation5 + $0x300] sm:$0xff]  }
 0x258   :  { %4665 = vmatprep.subr.bf16.mxu0 %v5180_v59  ;;  %4737 = vmatprep.subr.bf16.mxu1 %v5180_v59 }
 0x25b   :  { %4667 = vmatpush3.bf16.msra.mxu0 %v3390_v28  ;;  %4739 = vmatpush3.bf16.msra.mxu1 %v3414_v29  ;;  %v4984_v28 = vpack.c.bf16 %v2701_v26, %v2700_v25  ;;  %v2179_v29 = vld [vmem:[#allocation2 + $0xb] sm:$0x1] }
 0x25c   :  { %4668 = vmatprep.subr.bf16.mxu0 %v5180_v59  ;;  %4740 = vmatprep.subr.bf16.mxu1 %v5180_v59 }
 0x25f   :  { %4670 = vmatpush3.bf16.msra.mxu0 %v3391_v30  ;;  %4742 = vmatpush3.bf16.msra.mxu1 %v3415_v31  ;;  %v2699_v30 = vld [vmem:[%s5562_s4] sm:$0x1]  ;;  %v3465_v31 = vld [vmem:[#allocation5 + $0x308] sm:$0xff]  }
 0x260   :  { %4743 = vmatprep.subr.bf16.mxu1 %v5180_v59  ;;  %4983 = vmatprep.subr.bf16.mxu0 %v5180_v59 }
 0x262   :  { %4135 = vmatmul.mubr.f32.vlgmr.msra.gmra.mrb[4].mxu0 %v1243_v33  ;;  %4240 = vmatmul.mubr.f32.vlgmr.msra.gmra.mrb[0].mxu1 %v1555_v34  ;;  %v3467_v33 = vld [vmem:[#allocation5 + $0x318] sm:$0xff]   ;;  %v3468_v34 = vld [vmem:[#allocation5 + $0x320] sm:$0xff]  }
 0x263   :  { %4745 = vmatpush3.bf16.msra.mxu1 %v3416_v32  ;;  %4274 = vmatprep.mubr.msk.f32.mxu1 %vm5179_vm0, %v5178_v0  ;;  %v3466_v32 = vld [vmem:[#allocation5 + $0x310] sm:$0xff]  }
 0x264   :  { %4746 = vmatprep.subr.bf16.mxu1 %v5180_v59  ;;  %4596 = vmatprep.mubr.msk.f32.mxu0 %vm5179_vm0, %v5178_v0 }
 0x265   :  { %4985 = vmatpush3.bf16.msra.mxu0 %v4984_v28 }
 0x267   :  { %4748 = vmatpush3.bf16.msra.mxu1 %v3417_v35  ;;  %v3469_v35 = vld [vmem:[#allocation5 + $0x328] sm:$0xff]  }
 0x268   :  { %4749 = vmatprep.subr.bf16.mxu1 %v5180_v59  ;;  %4597 = vmatmul.mubr.msk.f32.vlgmr.msra.gmra.mrb[6].mxu0 %vm2702_vm1, %v2699_v30 }
 0x26b   :  { %4751 = vmatpush3.bf16.msra.mxu1 %v3418_v36 }
 0x26c   :  { %4752 = vmatprep.subr.bf16.mxu1 %v5180_v59 }
 0x26f   :  { %4754 = vmatpush3.bf16.msra.mxu1 %v3419_v37 }
 0x270   :  { %4755 = vmatprep.subr.bf16.mxu1 %v5180_v59 }
 0x273   :  { %4757 = vmatpush3.bf16.msra.mxu1 %v3420_v38  ;;  %v3470_v38 = vld [vmem:[#allocation5 + $0x330] sm:$0xff]  }
 0x274   :  { %4758 = vmatprep.subr.bf16.mxu1 %v5180_v59 }
 0x277   :  { %4760 = vmatpush3.bf16.msra.mxu1 %v3421_v39  ;;  %v3471_v39 = vld [vmem:[#allocation5 + $0x338] sm:$0xff]  }
 0x278   :  { %4761 = vmatprep.subr.bf16.mxu1 %v5180_v59 }
 0x27b   :  { %4763 = vmatpush3.bf16.msra.mxu1 %v3422_v40  ;;  %v3472_v40 = vld [vmem:[#allocation5 + $0x340] sm:$0xff]  }
 0x27c   :  { %4764 = vmatprep.subr.bf16.mxu1 %v5180_v59 }
 0x27f   :  { %4766 = vmatpush3.bf16.msra.mxu1 %v3423_v41  ;;  %v2283_v41 = vld [vmem:[#allocation2 + $0xc] sm:$0x1] }
 0x280   :  { %4767 = vmatprep.subr.bf16.mxu1 %v5180_v59 }
 0x282   :  { %4275 = vmatmul.mubr.f32.vlgmr.msra.gmra.mrb[0].mxu1 %v1659_v43  ;;  %v3474_v43 = vld [vmem:[#allocation5 + $0x350] sm:$0xff]  }
 0x283   :  { %4769 = vmatpush3.bf16.msra.mxu1 %v3424_v42  ;;  %4309 = vmatprep.mubr.msk.f32.mxu1 %vm5179_vm0, %v5178_v0  ;;  %v3473_v42 = vld [vmem:[#allocation5 + $0x348] sm:$0xff]  }
 0x284   :  { %4770 = vmatprep.subr.bf16.mxu1 %v5180_v59 }
 0x287   :  { %4772 = vmatpush3.bf16.msra.mxu1 %v3425_v44  ;;  %v3475_v44 = vld [vmem:[#allocation5 + $0x358] sm:$0xff]  }
 0x288   :  { %4773 = vmatprep.subr.bf16.mxu1 %v5180_v59 }
 0x28b   :  { %4775 = vmatpush3.bf16.msra.mxu1 %v3426_v45  ;;  %v3476_v45 = vld [vmem:[#allocation5 + $0x360] sm:$0xff]  }
 0x28c   :  { %4776 = vmatprep.subr.bf16.mxu1 %v5180_v59 }
 0x28f   :  { %4778 = vmatpush3.bf16.msra.mxu1 %v3427_v46  ;;  %v3477_v46 = vld [vmem:[#allocation5 + $0x368] sm:$0xff]  }
 0x290   :  { %4779 = vmatprep.subr.bf16.mxu1 %v5180_v59 }
 0x293   :  { %4781 = vmatpush3.bf16.msra.mxu1 %v3428_v21  ;;  %v3478_v21 = vld [vmem:[#allocation5 + $0x370] sm:$0xff]  }
 0x294   :  { %4782 = vmatprep.subr.bf16.mxu1 %v5180_v59 }
 0x297   :  { %4784 = vmatpush3.bf16.msra.mxu1 %v3429_v47  ;;  %v3479_v47 = vld [vmem:[#allocation5 + $0x378] sm:$0xff]  }
 0x298   :  { %4785 = vmatprep.subr.bf16.mxu1 %v5180_v59 }
 0x29b   :  { %4787 = vmatpush3.bf16.msra.mxu1 %v3430_v48  ;;  %v3480_v48 = vld [vmem:[#allocation5 + $0x380] sm:$0xff]  }
 0x29c   :  { %4788 = vmatprep.subr.bf16.mxu1 %v5180_v59 }
 0x29f   :  { %4790 = vmatpush3.bf16.msra.mxu1 %v3431_v49  ;;  %v2387_v49 = vld [vmem:[#allocation2 + $0xd] sm:$0x1] }
 0x2a0   :  { %4791 = vmatprep.subr.bf16.mxu1 %v5180_v59 }
 0x2a2   :  { %4310 = vmatmul.mubr.f32.vlgmr.msra.gmra.mrb[0].mxu1 %v1763_v51  ;;  %v3482_v51 = vld [vmem:[#allocation5 + $0x390] sm:$0xff]  }
 0x2a3   :  { %4793 = vmatpush3.bf16.msra.mxu1 %v3432_v50  ;;  %4344 = vmatprep.mubr.msk.f32.mxu1 %vm5179_vm0, %v5178_v0  ;;  %v3481_v50 = vld [vmem:[#allocation5 + $0x388] sm:$0xff]  }
 0x2a4   :  { %4794 = vmatprep.subr.bf16.mxu1 %v5180_v59 }
 0x2a7   :  { %4796 = vmatpush3.bf16.msra.mxu1 %v3433_v52  ;;  %v3483_v52 = vld [vmem:[#allocation5 + $0x398] sm:$0xff]  }
 0x2a8   :  { %4797 = vmatprep.subr.bf16.mxu1 %v5180_v59 }
 0x2ab   :  { %4799 = vmatpush3.bf16.msra.mxu1 %v3434_v53  ;;  %v3484_v53 = vld [vmem:[#allocation5 + $0x3a0] sm:$0xff]  }
 0x2ac   :  { %4800 = vmatprep.subr.bf16.mxu1 %v5180_v59 }
 0x2af   :  { %4802 = vmatpush3.bf16.msra.mxu1 %v3435_v54  ;;  %v3485_v54 = vld [vmem:[#allocation5 + $0x3a8] sm:$0xff]  }
 0x2b0   :  { %4803 = vmatprep.subr.bf16.mxu1 %v5180_v59 }
 0x2b3   :  { %4805 = vmatpush3.bf16.msra.mxu1 %v3436_v55  ;;  %v3486_v55 = vld [vmem:[#allocation5 + $0x3b0] sm:$0xff]  }
 0x2b4   :  { %4806 = vmatprep.subr.bf16.mxu1 %v5180_v59 }
 0x2b7   :  { %4808 = vmatpush3.bf16.msra.mxu1 %v3437_v56  ;;  %v3487_v56 = vld [vmem:[#allocation5 + $0x3b8] sm:$0xff]  }
 0x2b8   :  { %4809 = vmatprep.subr.bf16.mxu1 %v5180_v59 }
 0x2bb   :  { %4811 = vmatpush3.bf16.msra.mxu1 %v3438_v57  ;;  %v3488_v57 = vld [vmem:[#allocation5 + $0x3c0] sm:$0xff]  }
 0x2bc   :  { %4812 = vmatprep.subr.bf16.mxu1 %v5180_v59 }
 0x2bf   :  { %4814 = vmatpush3.bf16.msra.mxu1 %v3439_v58  ;;  %v2491_v58 = vld [vmem:[#allocation2 + $0xe] sm:$0x1] }
 0x2c0   :  { %4815 = vmatprep.subr.bf16.mxu1 %v5180_v59 }
 0x2c2   :  { %4345 = vmatmul.mubr.f32.vlgmr.msra.gmra.mrb[0].mxu1 %v1867_v61  ;;  %v3490_v61 = vld [vmem:[#allocation5 + $0x3d0] sm:$0xff]  }
 0x2c3   :  { %4817 = vmatpush3.bf16.msra.mxu1 %v3440_v60  ;;  %4379 = vmatprep.mubr.msk.f32.mxu1 %vm5179_vm0, %v5178_v0  ;;  %v3489_v60 = vld [vmem:[#allocation5 + $0x3c8] sm:$0xff]  }
 0x2c4   :  { %4818 = vmatprep.subr.bf16.mxu1 %v5180_v59 }
 0x2c7   :  { %4820 = vmatpush3.bf16.msra.mxu1 %v3441_v62  ;;  %v3491_v62 = vld [vmem:[#allocation5 + $0x3d8] sm:$0xff]  }
 0x2c8   :  { %4821 = vmatprep.subr.bf16.mxu1 %v5180_v59 }
 0x2cb   :  { %4823 = vmatpush3.bf16.msra.mxu1 %v3442_v63  ;;  %v3492_v63 = vld [vmem:[#allocation5 + $0x3e0] sm:$0xff]  }
 0x2cc   :  { %4824 = vmatprep.subr.bf16.mxu1 %v5180_v59 }
 0x2cf   :  { %4826 = vmatpush3.bf16.msra.mxu1 %v3443_v1  ;;  %v3493_v1 = vld [vmem:[#allocation5 + $0x3e8] sm:$0xff]  }
 0x2d0   :  { %4827 = vmatprep.subr.bf16.mxu1 %v5180_v59 }
 0x2d3   :  { %4829 = vmatpush3.bf16.msra.mxu1 %v3444_v2  ;;  %v3495_v2 = vld [vmem:[#allocation5 + $0x3f8] sm:$0xff]  }
 0x2d4   :  { %4830 = vmatprep.subr.bf16.mxu1 %v5180_v59 }
 0x2d7   :  { %4832 = vmatpush3.bf16.msra.mxu1 %v3445_v3  ;;  %v2595_v3 = vld [vmem:[#allocation2 + $0xf] sm:$0x1] }
 0x2d8   :  { %4833 = vmatprep.subr.bf16.mxu1 %v5180_v59 }
 0x2db   :  { %4835 = vmatpush3.bf16.msra.mxu1 %v3446_v4 }
 0x2dc   :  { %4836 = vmatprep.subr.bf16.mxu1 %v5180_v59 }
 0x2df   :  { %4838 = vmatpush3.bf16.msra.mxu1 %v3447_v5 }
 0x2e0   :  { %4839 = vmatprep.subr.bf16.mxu1 %v5180_v59 }
 0x2e2   :  { %4380 = vmatmul.mubr.f32.vlgmr.msra.gmra.mrb[0].mxu1 %v1971_v7 }
 0x2e3   :  { %4841 = vmatpush3.bf16.msra.mxu1 %v3448_v6  ;;  %4414 = vmatprep.mubr.msk.f32.mxu1 %vm5179_vm0, %v5178_v0 }
 0x2e4   :  { %4842 = vmatprep.subr.bf16.mxu1 %v5180_v59 }
 0x2e7   :  { %4844 = vmatpush3.bf16.msra.mxu1 %v3449_v8 }
 0x2e8   :  { %4845 = vmatprep.subr.bf16.mxu1 %v5180_v59 }
 0x2eb   :  { %4847 = vmatpush3.bf16.msra.mxu1 %v3450_v9 }
 0x2ec   :  { %4848 = vmatprep.subr.bf16.mxu1 %v5180_v59 }
 0x2ef   :  { %4850 = vmatpush3.bf16.msra.mxu1 %v3451_v10 }
 0x2f0   :  { %4851 = vmatprep.subr.bf16.mxu1 %v5180_v59 }
 0x2f3   :  { %4853 = vmatpush3.bf16.msra.mxu1 %v3452_v11 }
 0x2f4   :  { %4854 = vmatprep.subr.bf16.mxu1 %v5180_v59 }
 0x2f7   :  { %4856 = vmatpush3.bf16.msra.mxu1 %v3453_v12 }
 0x2f8   :  { %4857 = vmatprep.subr.bf16.mxu1 %v5180_v59 }
 0x2fb   :  { %4859 = vmatpush3.bf16.msra.mxu1 %v3454_v13 }
 0x2fc   :  { %4860 = vmatprep.subr.bf16.mxu1 %v5180_v59 }
 0x2ff   :  { %4862 = vmatpush3.bf16.msra.mxu1 %v3455_v14 }
 0x300   :  { %4863 = vmatprep.subr.bf16.mxu1 %v5180_v59 }
 0x302   :  { %4415 = vmatmul.mubr.f32.vlgmr.msra.gmra.mrb[0].mxu1 %v2075_v16 }
 0x303   :  { %4865 = vmatpush3.bf16.msra.mxu1 %v3456_v15  ;;  %4449 = vmatprep.mubr.msk.f32.mxu1 %vm5179_vm0, %v5178_v0 }
 0x304   :  { %4866 = vmatprep.subr.bf16.mxu1 %v5180_v59 }
 0x307   :  { %4868 = vmatpush3.bf16.msra.mxu1 %v3457_v17 }
 0x308   :  { %4869 = vmatprep.subr.bf16.mxu1 %v5180_v59 }
 0x30b   :  { %4871 = vmatpush3.bf16.msra.mxu1 %v3458_v18 }
 0x30c   :  { %4872 = vmatprep.subr.bf16.mxu1 %v5180_v59 }
 0x30f   :  { %4874 = vmatpush3.bf16.msra.mxu1 %v3459_v19 }
 0x310   :  { %4875 = vmatprep.subr.bf16.mxu1 %v5180_v59 }
 0x313   :  { %4877 = vmatpush3.bf16.msra.mxu1 %v3460_v20 }
 0x314   :  { %4878 = vmatprep.subr.bf16.mxu1 %v5180_v59 }
 0x317   :  { %4880 = vmatpush3.bf16.msra.mxu1 %v3461_v22 }
 0x318   :  { %4881 = vmatprep.subr.bf16.mxu1 %v5180_v59 }
 0x31b   :  { %4883 = vmatpush3.bf16.msra.mxu1 %v3462_v23 }
 0x31c   :  { %4884 = vmatprep.subr.bf16.mxu1 %v5180_v59 }
 0x31f   :  { %4886 = vmatpush3.bf16.msra.mxu1 %v3463_v24 }
 0x320   :  { %4887 = vmatprep.subr.bf16.mxu1 %v5180_v59 }
 0x322   :  { %4450 = vmatmul.mubr.f32.vlgmr.msra.gmra.mrb[0].mxu1 %v2179_v29 }
 0x323   :  { %4889 = vmatpush3.bf16.msra.mxu1 %v3464_v27  ;;  %4484 = vmatprep.mubr.msk.f32.mxu1 %vm5179_vm0, %v5178_v0 }
 0x324   :  { %4890 = vmatprep.subr.bf16.mxu1 %v5180_v59 }
 0x327   :  { %4892 = vmatpush3.bf16.msra.mxu1 %v3465_v31 }
 0x328   :  { %4893 = vmatprep.subr.bf16.mxu1 %v5180_v59 }
 0x32b   :  { %4895 = vmatpush3.bf16.msra.mxu1 %v3466_v32 }
 0x32c   :  { %4896 = vmatprep.subr.bf16.mxu1 %v5180_v59 }
 0x32f   :  { %4898 = vmatpush3.bf16.msra.mxu1 %v3467_v33 }
 0x330   :  { %4899 = vmatprep.subr.bf16.mxu1 %v5180_v59 }
 0x333   :  { %4901 = vmatpush3.bf16.msra.mxu1 %v3468_v34 }
 0x334   :  { %4902 = vmatprep.subr.bf16.mxu1 %v5180_v59 }
 0x335   :  { %v5520_v36 = vpop.f32.mrb[4].mxu0 }
 0x336   :  { %v4136_v37 = vpop.f32.mrb[5].mxu0 }
 0x337   :  { %4904 = vmatpush3.bf16.msra.mxu1 %v3469_v35 }
 0x338   :  { %4905 = vmatprep.subr.bf16.mxu1 %v5180_v59 }
 0x33b   :  { %4907 = vmatpush3.bf16.msra.mxu1 %v3470_v38  ;;  %v2772_v4 = vpop.f32.mrb[6].mxu0 }
 0x33c   :  { %4908 = vmatprep.subr.bf16.mxu1 %v5180_v59  ;;  %v4598_v5 = vpop.f32.mrb[7].mxu0 }
 0x33f   :  { %4910 = vmatpush3.bf16.msra.mxu1 %v3471_v39 }
 0x340   :  { %4911 = vmatprep.subr.bf16.mxu1 %v5180_v59 }
 0x342   :  { %4485 = vmatmul.mubr.f32.vlgmr.msra.gmra.mrb[0].mxu1 %v2283_v41 }
 0x343   :  { %4913 = vmatpush3.bf16.msra.mxu1 %v3472_v40  ;;  %4519 = vmatprep.mubr.msk.f32.mxu1 %vm5179_vm0, %v5178_v0 }
 0x344   :  { %4914 = vmatprep.subr.bf16.mxu1 %v5180_v59 }
 0x347   :  { %4916 = vmatpush3.bf16.msra.mxu1 %v3473_v42 }
 0x348   :  { %4917 = vmatprep.subr.bf16.mxu1 %v5180_v59 }
 0x34b   :  { %4919 = vmatpush3.bf16.msra.mxu1 %v3474_v43 }
 0x34c   :  { %4920 = vmatprep.subr.bf16.mxu1 %v5180_v59 }
 0x34f   :  { %4922 = vmatpush3.bf16.msra.mxu1 %v3475_v44 }
 0x350   :  { %4923 = vmatprep.subr.bf16.mxu1 %v5180_v59 }
 0x353   :  { %4925 = vmatpush3.bf16.msra.mxu1 %v3476_v45 }
 0x354   :  { %4926 = vmatprep.subr.bf16.mxu1 %v5180_v59 }
 0x357   :  { %4928 = vmatpush3.bf16.msra.mxu1 %v3477_v46 }
 0x358   :  { %4929 = vmatprep.subr.bf16.mxu1 %v5180_v59 }
 0x35b   :  { %4931 = vmatpush3.bf16.msra.mxu1 %v3478_v21 }
 0x35c   :  { %4932 = vmatprep.subr.bf16.mxu1 %v5180_v59 }
 0x35f   :  { %4934 = vmatpush3.bf16.msra.mxu1 %v3479_v47 }
 0x360   :  { %4935 = vmatprep.subr.bf16.mxu1 %v5180_v59 }
 0x362   :  { %4520 = vmatmul.mubr.f32.vlgmr.msra.gmra.mrb[0].mxu1 %v2387_v49 }
 0x363   :  { %4937 = vmatpush3.bf16.msra.mxu1 %v3480_v48  ;;  %4554 = vmatprep.mubr.msk.f32.mxu1 %vm5179_vm0, %v5178_v0 }
 0x364   :  { %4938 = vmatprep.subr.bf16.mxu1 %v5180_v59 }
 0x367   :  { %4940 = vmatpush3.bf16.msra.mxu1 %v3481_v50 }
 0x368   :  { %4941 = vmatprep.subr.bf16.mxu1 %v5180_v59 }
 0x36b   :  { %4943 = vmatpush3.bf16.msra.mxu1 %v3482_v51 }
 0x36c   :  { %4944 = vmatprep.subr.bf16.mxu1 %v5180_v59 }
 0x36f   :  { %4946 = vmatpush3.bf16.msra.mxu1 %v3483_v52 }
 0x370   :  { %4947 = vmatprep.subr.bf16.mxu1 %v5180_v59 }
 0x373   :  { %4949 = vmatpush3.bf16.msra.mxu1 %v3484_v53 }
 0x374   :  { %4950 = vmatprep.subr.bf16.mxu1 %v5180_v59 }
 0x377   :  { %4952 = vmatpush3.bf16.msra.mxu1 %v3485_v54 }
 0x378   :  { %4953 = vmatprep.subr.bf16.mxu1 %v5180_v59 }
 0x37b   :  { %4955 = vmatpush3.bf16.msra.mxu1 %v3486_v55 }
 0x37c   :  { %4956 = vmatprep.subr.bf16.mxu1 %v5180_v59 }
 0x37f   :  { %4958 = vmatpush3.bf16.msra.mxu1 %v3487_v56 }
 0x380   :  { %4959 = vmatprep.subr.bf16.mxu1 %v5180_v59 }
 0x382   :  { %4555 = vmatmul.mubr.f32.vlgmr.msra.gmra.mrb[0].mxu1 %v2491_v58 }
 0x383   :  { %4961 = vmatpush3.bf16.msra.mxu1 %v3488_v57  ;;  %4589 = vmatprep.mubr.msk.f32.mxu1 %vm5179_vm0, %v5178_v0  ;;  %v3494_v0 = vld [vmem:[#allocation5 + $0x3f0] sm:$0xff]  }
 0x384   :  { %4962 = vmatprep.subr.bf16.mxu1 %v5180_v59 }
 0x387   :  { %4964 = vmatpush3.bf16.msra.mxu1 %v3489_v60 }
 0x388   :  { %4965 = vmatprep.subr.bf16.mxu1 %v5180_v59 }
 0x38b   :  { %4967 = vmatpush3.bf16.msra.mxu1 %v3490_v61 }
 0x38c   :  { %4968 = vmatprep.subr.bf16.mxu1 %v5180_v59 }
 0x38f   :  { %4970 = vmatpush3.bf16.msra.mxu1 %v3491_v62 }
 0x390   :  { %4971 = vmatprep.subr.bf16.mxu1 %v5180_v59 }
 0x393   :  { %4973 = vmatpush3.bf16.msra.mxu1 %v3492_v63 }
 0x394   :  { %4974 = vmatprep.subr.bf16.mxu1 %v5180_v59 }
 0x397   :  { %4976 = vmatpush3.bf16.msra.mxu1 %v3493_v1 }
 0x398   :  { %4977 = vmatprep.subr.bf16.mxu1 %v5180_v59 }
 0x39b   :  { %4979 = vmatpush3.bf16.msra.mxu1 %v3494_v0 }
 0x39c   :  { %4980 = vmatprep.subr.bf16.mxu1 %v5180_v59 }
 0x39f   :  { %4982 = vmatpush3.bf16.msra.mxu1 %v3495_v2 }
 0x3a2   :  { %4590 = vmatmul.mubr.f32.vlgmr.msra.gmra.mrb[0].mxu1 %v2595_v3 }
 0x475   :  { %v2694_v6 = vpop.f32.mrb[0].mxu1 }
 0x476   :  { %v4986_v7 = vadd.f32 %v2694_v6, %v5520_v36  ;;  %v4591_v8 = vpop.f32.mrb[1].mxu1 }
 0x478   :  { %v2776_v9 = vmul.f32 %v4986_v7, %v2772_v4 }
 0x47a   :  { %2777 = vst [vmem:[%s5563_s5] sm:$0x1] %v2776_v9 }
 0x47b   :  { %2782 = vsyncpa [#allocation4], 1 }
 0x47c   :  { %2783 = vsyncpa [#allocation6], 1 }

</bundles_post_ra>
